<compile_context>
chip_gen: v6e
topology: v6e:2x2x1
jax: 0.10.0
libtpu: 0.0.40
codegen_flags: <defaults>
</compile_context>

<pallas_src>
import functools

import jax
import jax.numpy as jnp
from jax import lax
from jax.experimental import pallas as pl
from jax.experimental.pallas import tpu as pltpu

# Discriminator front-end conv bank (kernel sizes / 'same' paddings).
CONV_KERNELS = (1, 3, 5, 7)
CONV_PADDINGS = (0, 1, 2, 3)


# ---------------------------------------------------------------------------
# Pallas kernel: fused ResBlock stack
# ---------------------------------------------------------------------------
def _resblock_stack_kernel(x_ref, s_ref, w_ref, b_ref, o_ref):
    """Fused stack of ResBlocks on one lane-packed activation tile.

    x_ref: (1, L, W) f32   packed activations, W = G*C (lane-dense, 128 here).
    s_ref: (K, L, L) f32   per-tap shift matrices (zero-padded 'same' shifts).
    w_ref: (NL, 2, W, K*W) bf16  per (layer, conv): block-diagonal per-tap
                                 weights concatenated along the output axis.
    b_ref: (NL, 2, 1, W) f32     packed biases.
    o_ref: (1, L, W) f32
    """
    L = x_ref.shape[1]
    W = x_ref.shape[2]
    n_layers = w_ref.shape[0]
    n_taps = s_ref.shape[0]

    x = x_ref[0]                                          # (L, W) f32
    for layer in range(n_layers):                         # static unroll (small)
        h = x
        for conv in range(2):
            h = jnp.maximum(h, 0.0)                       # ReLU in f32
            # All K tap contributions in a single wide, lane-dense MXU matmul
            # (bf16 inputs, f32 accumulation).
            p = jnp.dot(h.astype(w_ref.dtype), w_ref[layer, conv],
                        preferred_element_type=jnp.float32)       # (L, K*W)
            # Tap k must be shifted by (k - pad) rows with zero fill; do it as a
            # tiny (L, L) matmul so it rides the MXU — no concatenate, no
            # unaligned sublane slices.  Lane slices of p are 128-aligned (free).
            acc = jnp.dot(s_ref[0], p[:, 0:W],
                          preferred_element_type=jnp.float32)
            for k in range(1, n_taps):
                acc = acc + jnp.dot(s_ref[k], p[:, k * W:(k + 1) * W],
                                    preferred_element_type=jnp.float32)
            h = acc + b_ref[layer, conv]                  # bias once, after taps
        x = x + 0.3 * h                                   # residual in f32
    o_ref[0] = x.astype(o_ref.dtype)


def resblock_stack_pallas(x_nlc, block_w, block_b, *, compute_dtype=jnp.bfloat16):
    """Apply the full ResBlock stack.

    x_nlc:   (B, L, C) f32 activations (channel-last layout).
    block_w: (NL, 2, C, C, K) torch Conv1d weights (C_out, C_in, K) per conv.
    block_b: (NL, 2, C) biases.
    Returns (B, L, C) f32.
    """
    B, L, C = x_nlc.shape
    NL = block_w.shape[0]
    K = block_w.shape[-1]
    pad = (K - 1) // 2

    # ---- lane-dense packing: G batch elements side by side along channels ----
    G = (128 // C) if (C <= 128 and 128 % C == 0) else 1
    Bp = ((B + G - 1) // G) * G
    n_groups = Bp // G
    W = G * C
    xp = jnp.pad(x_nlc, ((0, Bp - B), (0, 0), (0, 0)))
    xg = xp.reshape(n_groups, G, L, C).transpose(0, 2, 1, 3).reshape(n_groups, L, W)
    xg = xg.astype(jnp.float32)

    # ---- weights: (Co,Ci,K) -> per-tap (Ci,Co), block-diag over G, taps concat ----
    w_t = jnp.transpose(block_w, (0, 1, 4, 3, 2))          # (NL, 2, K, Ci, Co)
    eye_g = jnp.eye(G, dtype=w_t.dtype)
    w_bd = jnp.einsum('ab,lskio->lskaibo', eye_g, w_t).reshape(NL, 2, K, W, W)
    w_cat = jnp.transpose(w_bd, (0, 1, 3, 2, 4)).reshape(NL, 2, W, K * W)
    w_cat = w_cat.astype(compute_dtype)
    b_pack = jnp.tile(block_b, (1, 1, G)).reshape(NL, 2, 1, W).astype(jnp.float32)

    # ---- tap shift matrices: S[k][l, l'] = 1 iff l' == l + (k - pad) ----
    li = jnp.arange(L)[:, None]
    lj = jnp.arange(L)[None, :]
    s = jnp.stack([(lj == li + (k - pad)).astype(jnp.float32) for k in range(K)])

    out = pl.pallas_call(
        _resblock_stack_kernel,
        out_shape=jax.ShapeDtypeStruct((n_groups, L, W), jnp.float32),
        grid_spec=pltpu.PrefetchScalarGridSpec(
            num_scalar_prefetch=0,
            grid=(n_groups,),
            in_specs=[
                pl.BlockSpec((1, L, W), lambda g: (g, 0, 0)),
                # constant index maps: blocks below are grid-invariant
                pl.BlockSpec((K, L, L), lambda g: (0, 0, 0)),
                pl.BlockSpec((NL, 2, W, K * W), lambda g: (0, 0, 0, 0)),
                pl.BlockSpec((NL, 2, 1, W), lambda g: (0, 0, 0, 0)),
            ],
            out_specs=pl.BlockSpec((1, L, W), lambda g: (g, 0, 0)),
        ),
        compiler_params=pltpu.CompilerParams(
            dimension_semantics=("parallel",)),
    )(xg, s, w_cat, b_pack)

    out = out.reshape(n_groups, L, G, C).transpose(0, 2, 1, 3).reshape(Bp, L, C)
    return out[:B]


# ---------------------------------------------------------------------------
# Discriminator forward (plain JAX around the Pallas block), channel-last layout
# ---------------------------------------------------------------------------
def _front_end_nlc(params, seq):
    """emb linear + 4-kernel conv bank, staying in (B, L, C) layout."""
    emb = seq @ params['emb_w'].T + params['emb_b']                  # (B, L, hz)
    convs = []
    for w, b, p in zip(params['conv_w'], params['conv_b'], CONV_PADDINGS):
        y = lax.conv_general_dilated(
            emb, jnp.transpose(w, (2, 1, 0)), (1,), [(p, p)],
            dimension_numbers=("NHC", "HIO", "NHC")) + b[None, None, :]
        convs.append(jax.nn.relu(y))
    return jnp.concatenate(convs, axis=-1)                           # (B, L, hz)


def _tail(params, pred_nlc):
    """LayerNorm + highway + lin2 + lin + sigmoid (eval mode)."""
    mu = jnp.mean(pred_nlc, axis=-1, keepdims=True)
    var = jnp.mean(jnp.square(pred_nlc - mu), axis=-1, keepdims=True)
    pred = (pred_nlc - mu) * lax.rsqrt(var + 1e-5) * params['ln_g'] + params['ln_b']
    hw = pred @ params['hw_w'].T + params['hw_b']
    sig = jax.nn.sigmoid(hw)
    pred = sig * jax.nn.relu(hw) + (1.0 - sig) * pred
    pred = pred @ params['lin2_w'].T + params['lin2_b']              # (B, L, 1)
    flat = pred.reshape(pred.shape[0], -1)                           # (B, L)
    # TODO(synk): nn.Dropout implemented as eval-mode identity (no training RNG mask).
    return jax.nn.sigmoid(flat @ params['lin_w'].T + params['lin_b'])  # (B, 1)


def discriminator_pallas(params, seq):
    pre = _front_end_nlc(params, seq)
    blk = resblock_stack_pallas(pre, params['block_w'], params['block_b'])
    return _tail(params, blk)


# ---------------------------------------------------------------------------
# Pure-JAX reference mirroring the PyTorch module (NCL convs throughout)
# ---------------------------------------------------------------------------
def resblock_stack_reference(x_ncl, block_w, block_b):
    pred = x_ncl
    k = block_w.shape[-1]
    pad = (k - 1) // 2
    for l in range(block_w.shape[0]):
        h = pred
        for j in range(2):
            h = jax.nn.relu(h)
            h = lax.conv_general_dilated(
                h, block_w[l, j], (1,), [(pad, pad)],
                dimension_numbers=("NCH", "OIH", "NCH"))
            h = h + block_b[l, j][None, :, None]
        pred = pred + 0.3 * h
    return pred


def discriminator_reference(params, seq):
    emb = seq @ params['emb_w'].T + params['emb_b']                  # (B, L, hz)
    x = jnp.transpose(emb, (0, 2, 1))                                # (B, hz, L)
    convs = []
    for w, b, p in zip(params['conv_w'], params['conv_b'], CONV_PADDINGS):
        y = lax.conv_general_dilated(
            x, w, (1,), [(p, p)], dimension_numbers=("NCH", "OIH", "NCH"))
        convs.append(jax.nn.relu(y + b[None, :, None]))
    pred = jnp.concatenate(convs, axis=1)                            # (B, hz, L)
    pred = resblock_stack_reference(pred, params['block_w'], params['block_b'])
    return _tail(params, jnp.transpose(pred, (0, 2, 1)))


# ---------------------------------------------------------------------------
if __name__ == "__main__":
    B, L, VOCAB, HZ, RES_LAYERS = 2, 16, 16, 32, 2
    LATENT = HZ // 4        # module requires 4 * latent_dim == hidden_size

    key = jax.random.PRNGKey(0)
    keys = iter(jax.random.split(key, 24))

    def uni(shape):
        return jax.random.uniform(next(keys), shape, minval=-0.05, maxval=0.05,
                                  dtype=jnp.float32)

    params = {
        'emb_w': uni((HZ, VOCAB)), 'emb_b': uni((HZ,)),
        'conv_w': [uni((LATENT, HZ, k)) for k in CONV_KERNELS],
        'conv_b': [uni((LATENT,)) for _ in CONV_KERNELS],
        'block_w': uni((RES_LAYERS, 2, HZ, HZ, 5)),
        'block_b': uni((RES_LAYERS, 2, HZ)),
        'ln_g': uni((HZ,)), 'ln_b': uni((HZ,)),
        'hw_w': uni((HZ, HZ)), 'hw_b': uni((HZ,)),
        'lin2_w': uni((1, HZ)), 'lin2_b': uni((1,)),
        'lin_w': uni((1, L)), 'lin_b': uni((1,)),
    }
    seq = jax.random.normal(next(keys), (B, L, VOCAB), dtype=jnp.float32)

    # Run the Pallas-backed forward.
    validity = jax.jit(discriminator_pallas)(params, seq)
    validity = jax.block_until_ready(validity)
    assert validity.shape == (B, 1)

    # Check the Pallas ResBlock stack directly against the PyTorch-layout reference.
    pre = _front_end_nlc(params, seq)
    blk_pallas = resblock_stack_pallas(pre, params['block_w'], params['block_b'])
    blk_ref = jnp.transpose(
        resblock_stack_reference(jnp.transpose(pre, (0, 2, 1)),
                                 params['block_w'], params['block_b']),
        (0, 2, 1))
    assert jnp.allclose(blk_pallas, blk_ref, atol=2e-3, rtol=2e-3), \
        "ResBlock stack mismatch vs reference"

    # Check the full discriminator output.
    validity_ref = discriminator_reference(params, seq)
    assert jnp.allclose(validity, validity_ref, atol=2e-3, rtol=2e-3), \
        "Discriminator output mismatch vs reference"

    print("KERNEL_OK")
</pallas_src>

<mosaic_0001>
module attributes {stable_mosaic.version = 11 : i64} {
  func.func @_resblock_stack_kernel(%arg0: i32, %arg1: memref<1x16x128xf32, #tpu.memory_space<vmem>>, %arg2: memref<5x16x16xf32, #tpu.memory_space<vmem>>, %arg3: memref<2x2x128x640xbf16, #tpu.memory_space<vmem>>, %arg4: memref<2x2x1x128xf32, #tpu.memory_space<vmem>>, %arg5: memref<1x16x128xf32, #tpu.memory_space<vmem>>) attributes {dimension_semantics = [#tpu.dimension_semantics<parallel>], iteration_bounds = array<i64: 1>, scalar_prefetch = 0 : i64, scratch_operands = 0 : i64, tpu.core_type = #tpu.core_type<tc>, window_params = [{transform_indices = @transform_0, window_bounds = array<i64: 1, 16, 128>}, {pipeline_mode = #tpu.pipeline_mode<synchronous>, transform_indices = @transform_1, window_bounds = array<i64: 5, 16, 16>}, {pipeline_mode = #tpu.pipeline_mode<synchronous>, transform_indices = @transform_2, window_bounds = array<i64: 2, 2, 128, 640>}, {pipeline_mode = #tpu.pipeline_mode<synchronous>, transform_indices = @transform_3, window_bounds = array<i64: 2, 2, 1, 128>}, {transform_indices = @transform_4, window_bounds = array<i64: 1, 16, 128>}]} {
    %c0 = arith.constant 0 : index
    %c0_0 = arith.constant 0 : index
    %c0_1 = arith.constant 0 : index
    %0 = vector.load %arg1[%c0, %c0_0, %c0_1] : memref<1x16x128xf32, #tpu.memory_space<vmem>>, vector<1x16x128xf32>
    %1 = vector.shape_cast %0 : vector<1x16x128xf32> to vector<16x128xf32>
    %cst = arith.constant 0.000000e+00 : f32
    %2 = vector.broadcast %cst : f32 to vector<16x128xf32>
    %3 = arith.maximumf %1, %2 : vector<16x128xf32>
    %4 = arith.truncf %3 : vector<16x128xf32> to vector<16x128xbf16>
    %c0_2 = arith.constant 0 : index
    %c0_3 = arith.constant 0 : index
    %c0_4 = arith.constant 0 : index
    %c0_5 = arith.constant 0 : index
    %5 = vector.load %arg3[%c0_2, %c0_3, %c0_4, %c0_5] : memref<2x2x128x640xbf16, #tpu.memory_space<vmem>>, vector<1x1x128x640xbf16>
    %6 = vector.shape_cast %5 : vector<1x1x128x640xbf16> to vector<128x640xbf16>
    %cst_6 = arith.constant dense<0.000000e+00> : vector<16x640xf32>
    %7 = tpu.matmul %4, %6, %cst_6 {dimension_numbers = #tpu.dot_dimension_numbers<[1], [0], [0], [1], [0, 0, 1, 1], [], []>} : vector<16x128xbf16>, vector<128x640xbf16>, vector<16x640xf32> -> vector<16x640xf32>
    %c0_7 = arith.constant 0 : index
    %c0_8 = arith.constant 0 : index
    %c0_9 = arith.constant 0 : index
    %8 = vector.load %arg2[%c0_7, %c0_8, %c0_9] : memref<5x16x16xf32, #tpu.memory_space<vmem>>, vector<1x16x16xf32>
    %9 = vector.shape_cast %8 : vector<1x16x16xf32> to vector<16x16xf32>
    %10 = vector.extract_strided_slice %7 {offsets = [0, 0], sizes = [16, 128], strides = [1, 1]} : vector<16x640xf32> to vector<16x128xf32>
    %cst_10 = arith.constant dense<0.000000e+00> : vector<16x128xf32>
    %11 = tpu.matmul %9, %10, %cst_10 {dimension_numbers = #tpu.dot_dimension_numbers<[1], [0], [0], [1], [0, 0, 1, 1], [], []>} : vector<16x16xf32>, vector<16x128xf32>, vector<16x128xf32> -> vector<16x128xf32>
    %c1 = arith.constant 1 : index
    %c0_11 = arith.constant 0 : index
    %c0_12 = arith.constant 0 : index
    %12 = vector.load %arg2[%c1, %c0_11, %c0_12] : memref<5x16x16xf32, #tpu.memory_space<vmem>>, vector<1x16x16xf32>
    %13 = vector.shape_cast %12 : vector<1x16x16xf32> to vector<16x16xf32>
    %14 = vector.extract_strided_slice %7 {offsets = [0, 128], sizes = [16, 128], strides = [1, 1]} : vector<16x640xf32> to vector<16x128xf32>
    %cst_13 = arith.constant dense<0.000000e+00> : vector<16x128xf32>
    %15 = tpu.matmul %13, %14, %cst_13 {dimension_numbers = #tpu.dot_dimension_numbers<[1], [0], [0], [1], [0, 0, 1, 1], [], []>} : vector<16x16xf32>, vector<16x128xf32>, vector<16x128xf32> -> vector<16x128xf32>
    %16 = arith.addf %11, %15 : vector<16x128xf32>
    %c2 = arith.constant 2 : index
    %c0_14 = arith.constant 0 : index
    %c0_15 = arith.constant 0 : index
    %17 = vector.load %arg2[%c2, %c0_14, %c0_15] : memref<5x16x16xf32, #tpu.memory_space<vmem>>, vector<1x16x16xf32>
    %18 = vector.shape_cast %17 : vector<1x16x16xf32> to vector<16x16xf32>
    %19 = vector.extract_strided_slice %7 {offsets = [0, 256], sizes = [16, 128], strides = [1, 1]} : vector<16x640xf32> to vector<16x128xf32>
    %cst_16 = arith.constant dense<0.000000e+00> : vector<16x128xf32>
    %20 = tpu.matmul %18, %19, %cst_16 {dimension_numbers = #tpu.dot_dimension_numbers<[1], [0], [0], [1], [0, 0, 1, 1], [], []>} : vector<16x16xf32>, vector<16x128xf32>, vector<16x128xf32> -> vector<16x128xf32>
    %21 = arith.addf %16, %20 : vector<16x128xf32>
    %c3 = arith.constant 3 : index
    %c0_17 = arith.constant 0 : index
    %c0_18 = arith.constant 0 : index
    %22 = vector.load %arg2[%c3, %c0_17, %c0_18] : memref<5x16x16xf32, #tpu.memory_space<vmem>>, vector<1x16x16xf32>
    %23 = vector.shape_cast %22 : vector<1x16x16xf32> to vector<16x16xf32>
    %24 = vector.extract_strided_slice %7 {offsets = [0, 384], sizes = [16, 128], strides = [1, 1]} : vector<16x640xf32> to vector<16x128xf32>
    %cst_19 = arith.constant dense<0.000000e+00> : vector<16x128xf32>
    %25 = tpu.matmul %23, %24, %cst_19 {dimension_numbers = #tpu.dot_dimension_numbers<[1], [0], [0], [1], [0, 0, 1, 1], [], []>} : vector<16x16xf32>, vector<16x128xf32>, vector<16x128xf32> -> vector<16x128xf32>
    %26 = arith.addf %21, %25 : vector<16x128xf32>
    %c4 = arith.constant 4 : index
    %c0_20 = arith.constant 0 : index
    %c0_21 = arith.constant 0 : index
    %27 = vector.load %arg2[%c4, %c0_20, %c0_21] : memref<5x16x16xf32, #tpu.memory_space<vmem>>, vector<1x16x16xf32>
    %28 = vector.shape_cast %27 : vector<1x16x16xf32> to vector<16x16xf32>
    %29 = vector.extract_strided_slice %7 {offsets = [0, 512], sizes = [16, 128], strides = [1, 1]} : vector<16x640xf32> to vector<16x128xf32>
    %cst_22 = arith.constant dense<0.000000e+00> : vector<16x128xf32>
    %30 = tpu.matmul %28, %29, %cst_22 {dimension_numbers = #tpu.dot_dimension_numbers<[1], [0], [0], [1], [0, 0, 1, 1], [], []>} : vector<16x16xf32>, vector<16x128xf32>, vector<16x128xf32> -> vector<16x128xf32>
    %31 = arith.addf %26, %30 : vector<16x128xf32>
    %c0_23 = arith.constant 0 : index
    %c0_24 = arith.constant 0 : index
    %c0_25 = arith.constant 0 : index
    %c0_26 = arith.constant 0 : index
    %32 = vector.load %arg4[%c0_23, %c0_24, %c0_25, %c0_26] : memref<2x2x1x128xf32, #tpu.memory_space<vmem>>, vector<1x1x1x128xf32>
    %33 = vector.shape_cast %32 : vector<1x1x1x128xf32> to vector<1x128xf32>
    %34 = vector.broadcast %33 : vector<1x128xf32> to vector<16x128xf32>
    %35 = arith.addf %31, %34 : vector<16x128xf32>
    %cst_27 = arith.constant 0.000000e+00 : f32
    %36 = vector.broadcast %cst_27 : f32 to vector<16x128xf32>
    %37 = arith.maximumf %35, %36 : vector<16x128xf32>
    %38 = arith.truncf %37 : vector<16x128xf32> to vector<16x128xbf16>
    %c0_28 = arith.constant 0 : index
    %c1_29 = arith.constant 1 : index
    %c0_30 = arith.constant 0 : index
    %c0_31 = arith.constant 0 : index
    %39 = vector.load %arg3[%c0_28, %c1_29, %c0_30, %c0_31] : memref<2x2x128x640xbf16, #tpu.memory_space<vmem>>, vector<1x1x128x640xbf16>
    %40 = vector.shape_cast %39 : vector<1x1x128x640xbf16> to vector<128x640xbf16>
    %cst_32 = arith.constant dense<0.000000e+00> : vector<16x640xf32>
    %41 = tpu.matmul %38, %40, %cst_32 {dimension_numbers = #tpu.dot_dimension_numbers<[1], [0], [0], [1], [0, 0, 1, 1], [], []>} : vector<16x128xbf16>, vector<128x640xbf16>, vector<16x640xf32> -> vector<16x640xf32>
    %c0_33 = arith.constant 0 : index
    %c0_34 = arith.constant 0 : index
    %c0_35 = arith.constant 0 : index
    %42 = vector.load %arg2[%c0_33, %c0_34, %c0_35] : memref<5x16x16xf32, #tpu.memory_space<vmem>>, vector<1x16x16xf32>
    %43 = vector.shape_cast %42 : vector<1x16x16xf32> to vector<16x16xf32>
    %44 = vector.extract_strided_slice %41 {offsets = [0, 0], sizes = [16, 128], strides = [1, 1]} : vector<16x640xf32> to vector<16x128xf32>
    %cst_36 = arith.constant dense<0.000000e+00> : vector<16x128xf32>
    %45 = tpu.matmul %43, %44, %cst_36 {dimension_numbers = #tpu.dot_dimension_numbers<[1], [0], [0], [1], [0, 0, 1, 1], [], []>} : vector<16x16xf32>, vector<16x128xf32>, vector<16x128xf32> -> vector<16x128xf32>
    %c1_37 = arith.constant 1 : index
    %c0_38 = arith.constant 0 : index
    %c0_39 = arith.constant 0 : index
    %46 = vector.load %arg2[%c1_37, %c0_38, %c0_39] : memref<5x16x16xf32, #tpu.memory_space<vmem>>, vector<1x16x16xf32>
    %47 = vector.shape_cast %46 : vector<1x16x16xf32> to vector<16x16xf32>
    %48 = vector.extract_strided_slice %41 {offsets = [0, 128], sizes = [16, 128], strides = [1, 1]} : vector<16x640xf32> to vector<16x128xf32>
    %cst_40 = arith.constant dense<0.000000e+00> : vector<16x128xf32>
    %49 = tpu.matmul %47, %48, %cst_40 {dimension_numbers = #tpu.dot_dimension_numbers<[1], [0], [0], [1], [0, 0, 1, 1], [], []>} : vector<16x16xf32>, vector<16x128xf32>, vector<16x128xf32> -> vector<16x128xf32>
    %50 = arith.addf %45, %49 : vector<16x128xf32>
    %c2_41 = arith.constant 2 : index
    %c0_42 = arith.constant 0 : index
    %c0_43 = arith.constant 0 : index
    %51 = vector.load %arg2[%c2_41, %c0_42, %c0_43] : memref<5x16x16xf32, #tpu.memory_space<vmem>>, vector<1x16x16xf32>
    %52 = vector.shape_cast %51 : vector<1x16x16xf32> to vector<16x16xf32>
    %53 = vector.extract_strided_slice %41 {offsets = [0, 256], sizes = [16, 128], strides = [1, 1]} : vector<16x640xf32> to vector<16x128xf32>
    %cst_44 = arith.constant dense<0.000000e+00> : vector<16x128xf32>
    %54 = tpu.matmul %52, %53, %cst_44 {dimension_numbers = #tpu.dot_dimension_numbers<[1], [0], [0], [1], [0, 0, 1, 1], [], []>} : vector<16x16xf32>, vector<16x128xf32>, vector<16x128xf32> -> vector<16x128xf32>
    %55 = arith.addf %50, %54 : vector<16x128xf32>
    %c3_45 = arith.constant 3 : index
    %c0_46 = arith.constant 0 : index
    %c0_47 = arith.constant 0 : index
    %56 = vector.load %arg2[%c3_45, %c0_46, %c0_47] : memref<5x16x16xf32, #tpu.memory_space<vmem>>, vector<1x16x16xf32>
    %57 = vector.shape_cast %56 : vector<1x16x16xf32> to vector<16x16xf32>
    %58 = vector.extract_strided_slice %41 {offsets = [0, 384], sizes = [16, 128], strides = [1, 1]} : vector<16x640xf32> to vector<16x128xf32>
    %cst_48 = arith.constant dense<0.000000e+00> : vector<16x128xf32>
    %59 = tpu.matmul %57, %58, %cst_48 {dimension_numbers = #tpu.dot_dimension_numbers<[1], [0], [0], [1], [0, 0, 1, 1], [], []>} : vector<16x16xf32>, vector<16x128xf32>, vector<16x128xf32> -> vector<16x128xf32>
    %60 = arith.addf %55, %59 : vector<16x128xf32>
    %c4_49 = arith.constant 4 : index
    %c0_50 = arith.constant 0 : index
    %c0_51 = arith.constant 0 : index
    %61 = vector.load %arg2[%c4_49, %c0_50, %c0_51] : memref<5x16x16xf32, #tpu.memory_space<vmem>>, vector<1x16x16xf32>
    %62 = vector.shape_cast %61 : vector<1x16x16xf32> to vector<16x16xf32>
    %63 = vector.extract_strided_slice %41 {offsets = [0, 512], sizes = [16, 128], strides = [1, 1]} : vector<16x640xf32> to vector<16x128xf32>
    %cst_52 = arith.constant dense<0.000000e+00> : vector<16x128xf32>
    %64 = tpu.matmul %62, %63, %cst_52 {dimension_numbers = #tpu.dot_dimension_numbers<[1], [0], [0], [1], [0, 0, 1, 1], [], []>} : vector<16x16xf32>, vector<16x128xf32>, vector<16x128xf32> -> vector<16x128xf32>
    %65 = arith.addf %60, %64 : vector<16x128xf32>
    %c0_53 = arith.constant 0 : index
    %c1_54 = arith.constant 1 : index
    %c0_55 = arith.constant 0 : index
    %c0_56 = arith.constant 0 : index
    %66 = vector.load %arg4[%c0_53, %c1_54, %c0_55, %c0_56] : memref<2x2x1x128xf32, #tpu.memory_space<vmem>>, vector<1x1x1x128xf32>
    %67 = vector.shape_cast %66 : vector<1x1x1x128xf32> to vector<1x128xf32>
    %68 = vector.broadcast %67 : vector<1x128xf32> to vector<16x128xf32>
    %69 = arith.addf %65, %68 : vector<16x128xf32>
    %cst_57 = arith.constant 3.000000e-01 : f32
    %70 = vector.broadcast %cst_57 : f32 to vector<16x128xf32>
    %71 = arith.mulf %70, %69 : vector<16x128xf32>
    %72 = arith.addf %1, %71 : vector<16x128xf32>
    %cst_58 = arith.constant 0.000000e+00 : f32
    %73 = vector.broadcast %cst_58 : f32 to vector<16x128xf32>
    %74 = arith.maximumf %72, %73 : vector<16x128xf32>
    %75 = arith.truncf %74 : vector<16x128xf32> to vector<16x128xbf16>
    %c1_59 = arith.constant 1 : index
    %c0_60 = arith.constant 0 : index
    %c0_61 = arith.constant 0 : index
    %c0_62 = arith.constant 0 : index
    %76 = vector.load %arg3[%c1_59, %c0_60, %c0_61, %c0_62] : memref<2x2x128x640xbf16, #tpu.memory_space<vmem>>, vector<1x1x128x640xbf16>
    %77 = vector.shape_cast %76 : vector<1x1x128x640xbf16> to vector<128x640xbf16>
    %cst_63 = arith.constant dense<0.000000e+00> : vector<16x640xf32>
    %78 = tpu.matmul %75, %77, %cst_63 {dimension_numbers = #tpu.dot_dimension_numbers<[1], [0], [0], [1], [0, 0, 1, 1], [], []>} : vector<16x128xbf16>, vector<128x640xbf16>, vector<16x640xf32> -> vector<16x640xf32>
    %c0_64 = arith.constant 0 : index
    %c0_65 = arith.constant 0 : index
    %c0_66 = arith.constant 0 : index
    %79 = vector.load %arg2[%c0_64, %c0_65, %c0_66] : memref<5x16x16xf32, #tpu.memory_space<vmem>>, vector<1x16x16xf32>
    %80 = vector.shape_cast %79 : vector<1x16x16xf32> to vector<16x16xf32>
    %81 = vector.extract_strided_slice %78 {offsets = [0, 0], sizes = [16, 128], strides = [1, 1]} : vector<16x640xf32> to vector<16x128xf32>
    %cst_67 = arith.constant dense<0.000000e+00> : vector<16x128xf32>
    %82 = tpu.matmul %80, %81, %cst_67 {dimension_numbers = #tpu.dot_dimension_numbers<[1], [0], [0], [1], [0, 0, 1, 1], [], []>} : vector<16x16xf32>, vector<16x128xf32>, vector<16x128xf32> -> vector<16x128xf32>
    %c1_68 = arith.constant 1 : index
    %c0_69 = arith.constant 0 : index
    %c0_70 = arith.constant 0 : index
    %83 = vector.load %arg2[%c1_68, %c0_69, %c0_70] : memref<5x16x16xf32, #tpu.memory_space<vmem>>, vector<1x16x16xf32>
    %84 = vector.shape_cast %83 : vector<1x16x16xf32> to vector<16x16xf32>
    %85 = vector.extract_strided_slice %78 {offsets = [0, 128], sizes = [16, 128], strides = [1, 1]} : vector<16x640xf32> to vector<16x128xf32>
    %cst_71 = arith.constant dense<0.000000e+00> : vector<16x128xf32>
    %86 = tpu.matmul %84, %85, %cst_71 {dimension_numbers = #tpu.dot_dimension_numbers<[1], [0], [0], [1], [0, 0, 1, 1], [], []>} : vector<16x16xf32>, vector<16x128xf32>, vector<16x128xf32> -> vector<16x128xf32>
    %87 = arith.addf %82, %86 : vector<16x128xf32>
    %c2_72 = arith.constant 2 : index
    %c0_73 = arith.constant 0 : index
    %c0_74 = arith.constant 0 : index
    %88 = vector.load %arg2[%c2_72, %c0_73, %c0_74] : memref<5x16x16xf32, #tpu.memory_space<vmem>>, vector<1x16x16xf32>
    %89 = vector.shape_cast %88 : vector<1x16x16xf32> to vector<16x16xf32>
    %90 = vector.extract_strided_slice %78 {offsets = [0, 256], sizes = [16, 128], strides = [1, 1]} : vector<16x640xf32> to vector<16x128xf32>
    %cst_75 = arith.constant dense<0.000000e+00> : vector<16x128xf32>
    %91 = tpu.matmul %89, %90, %cst_75 {dimension_numbers = #tpu.dot_dimension_numbers<[1], [0], [0], [1], [0, 0, 1, 1], [], []>} : vector<16x16xf32>, vector<16x128xf32>, vector<16x128xf32> -> vector<16x128xf32>
    %92 = arith.addf %87, %91 : vector<16x128xf32>
    %c3_76 = arith.constant 3 : index
    %c0_77 = arith.constant 0 : index
    %c0_78 = arith.constant 0 : index
    %93 = vector.load %arg2[%c3_76, %c0_77, %c0_78] : memref<5x16x16xf32, #tpu.memory_space<vmem>>, vector<1x16x16xf32>
    %94 = vector.shape_cast %93 : vector<1x16x16xf32> to vector<16x16xf32>
    %95 = vector.extract_strided_slice %78 {offsets = [0, 384], sizes = [16, 128], strides = [1, 1]} : vector<16x640xf32> to vector<16x128xf32>
    %cst_79 = arith.constant dense<0.000000e+00> : vector<16x128xf32>
    %96 = tpu.matmul %94, %95, %cst_79 {dimension_numbers = #tpu.dot_dimension_numbers<[1], [0], [0], [1], [0, 0, 1, 1], [], []>} : vector<16x16xf32>, vector<16x128xf32>, vector<16x128xf32> -> vector<16x128xf32>
    %97 = arith.addf %92, %96 : vector<16x128xf32>
    %c4_80 = arith.constant 4 : index
    %c0_81 = arith.constant 0 : index
    %c0_82 = arith.constant 0 : index
    %98 = vector.load %arg2[%c4_80, %c0_81, %c0_82] : memref<5x16x16xf32, #tpu.memory_space<vmem>>, vector<1x16x16xf32>
    %99 = vector.shape_cast %98 : vector<1x16x16xf32> to vector<16x16xf32>
    %100 = vector.extract_strided_slice %78 {offsets = [0, 512], sizes = [16, 128], strides = [1, 1]} : vector<16x640xf32> to vector<16x128xf32>
    %cst_83 = arith.constant dense<0.000000e+00> : vector<16x128xf32>
    %101 = tpu.matmul %99, %100, %cst_83 {dimension_numbers = #tpu.dot_dimension_numbers<[1], [0], [0], [1], [0, 0, 1, 1], [], []>} : vector<16x16xf32>, vector<16x128xf32>, vector<16x128xf32> -> vector<16x128xf32>
    %102 = arith.addf %97, %101 : vector<16x128xf32>
    %c1_84 = arith.constant 1 : index
    %c0_85 = arith.constant 0 : index
    %c0_86 = arith.constant 0 : index
    %c0_87 = arith.constant 0 : index
    %103 = vector.load %arg4[%c1_84, %c0_85, %c0_86, %c0_87] : memref<2x2x1x128xf32, #tpu.memory_space<vmem>>, vector<1x1x1x128xf32>
    %104 = vector.shape_cast %103 : vector<1x1x1x128xf32> to vector<1x128xf32>
    %105 = vector.broadcast %104 : vector<1x128xf32> to vector<16x128xf32>
    %106 = arith.addf %102, %105 : vector<16x128xf32>
    %cst_88 = arith.constant 0.000000e+00 : f32
    %107 = vector.broadcast %cst_88 : f32 to vector<16x128xf32>
    %108 = arith.maximumf %106, %107 : vector<16x128xf32>
    %109 = arith.truncf %108 : vector<16x128xf32> to vector<16x128xbf16>
    %c1_89 = arith.constant 1 : index
    %c1_90 = arith.constant 1 : index
    %c0_91 = arith.constant 0 : index
    %c0_92 = arith.constant 0 : index
    %110 = vector.load %arg3[%c1_89, %c1_90, %c0_91, %c0_92] : memref<2x2x128x640xbf16, #tpu.memory_space<vmem>>, vector<1x1x128x640xbf16>
    %111 = vector.shape_cast %110 : vector<1x1x128x640xbf16> to vector<128x640xbf16>
    %cst_93 = arith.constant dense<0.000000e+00> : vector<16x640xf32>
    %112 = tpu.matmul %109, %111, %cst_93 {dimension_numbers = #tpu.dot_dimension_numbers<[1], [0], [0], [1], [0, 0, 1, 1], [], []>} : vector<16x128xbf16>, vector<128x640xbf16>, vector<16x640xf32> -> vector<16x640xf32>
    %c0_94 = arith.constant 0 : index
    %c0_95 = arith.constant 0 : index
    %c0_96 = arith.constant 0 : index
    %113 = vector.load %arg2[%c0_94, %c0_95, %c0_96] : memref<5x16x16xf32, #tpu.memory_space<vmem>>, vector<1x16x16xf32>
    %114 = vector.shape_cast %113 : vector<1x16x16xf32> to vector<16x16xf32>
    %115 = vector.extract_strided_slice %112 {offsets = [0, 0], sizes = [16, 128], strides = [1, 1]} : vector<16x640xf32> to vector<16x128xf32>
    %cst_97 = arith.constant dense<0.000000e+00> : vector<16x128xf32>
    %116 = tpu.matmul %114, %115, %cst_97 {dimension_numbers = #tpu.dot_dimension_numbers<[1], [0], [0], [1], [0, 0, 1, 1], [], []>} : vector<16x16xf32>, vector<16x128xf32>, vector<16x128xf32> -> vector<16x128xf32>
    %c1_98 = arith.constant 1 : index
    %c0_99 = arith.constant 0 : index
    %c0_100 = arith.constant 0 : index
    %117 = vector.load %arg2[%c1_98, %c0_99, %c0_100] : memref<5x16x16xf32, #tpu.memory_space<vmem>>, vector<1x16x16xf32>
    %118 = vector.shape_cast %117 : vector<1x16x16xf32> to vector<16x16xf32>
    %119 = vector.extract_strided_slice %112 {offsets = [0, 128], sizes = [16, 128], strides = [1, 1]} : vector<16x640xf32> to vector<16x128xf32>
    %cst_101 = arith.constant dense<0.000000e+00> : vector<16x128xf32>
    %120 = tpu.matmul %118, %119, %cst_101 {dimension_numbers = #tpu.dot_dimension_numbers<[1], [0], [0], [1], [0, 0, 1, 1], [], []>} : vector<16x16xf32>, vector<16x128xf32>, vector<16x128xf32> -> vector<16x128xf32>
    %121 = arith.addf %116, %120 : vector<16x128xf32>
    %c2_102 = arith.constant 2 : index
    %c0_103 = arith.constant 0 : index
    %c0_104 = arith.constant 0 : index
    %122 = vector.load %arg2[%c2_102, %c0_103, %c0_104] : memref<5x16x16xf32, #tpu.memory_space<vmem>>, vector<1x16x16xf32>
    %123 = vector.shape_cast %122 : vector<1x16x16xf32> to vector<16x16xf32>
    %124 = vector.extract_strided_slice %112 {offsets = [0, 256], sizes = [16, 128], strides = [1, 1]} : vector<16x640xf32> to vector<16x128xf32>
    %cst_105 = arith.constant dense<0.000000e+00> : vector<16x128xf32>
    %125 = tpu.matmul %123, %124, %cst_105 {dimension_numbers = #tpu.dot_dimension_numbers<[1], [0], [0], [1], [0, 0, 1, 1], [], []>} : vector<16x16xf32>, vector<16x128xf32>, vector<16x128xf32> -> vector<16x128xf32>
    %126 = arith.addf %121, %125 : vector<16x128xf32>
    %c3_106 = arith.constant 3 : index
    %c0_107 = arith.constant 0 : index
    %c0_108 = arith.constant 0 : index
    %127 = vector.load %arg2[%c3_106, %c0_107, %c0_108] : memref<5x16x16xf32, #tpu.memory_space<vmem>>, vector<1x16x16xf32>
    %128 = vector.shape_cast %127 : vector<1x16x16xf32> to vector<16x16xf32>
    %129 = vector.extract_strided_slice %112 {offsets = [0, 384], sizes = [16, 128], strides = [1, 1]} : vector<16x640xf32> to vector<16x128xf32>
    %cst_109 = arith.constant dense<0.000000e+00> : vector<16x128xf32>
    %130 = tpu.matmul %128, %129, %cst_109 {dimension_numbers = #tpu.dot_dimension_numbers<[1], [0], [0], [1], [0, 0, 1, 1], [], []>} : vector<16x16xf32>, vector<16x128xf32>, vector<16x128xf32> -> vector<16x128xf32>
    %131 = arith.addf %126, %130 : vector<16x128xf32>
    %c4_110 = arith.constant 4 : index
    %c0_111 = arith.constant 0 : index
    %c0_112 = arith.constant 0 : index
    %132 = vector.load %arg2[%c4_110, %c0_111, %c0_112] : memref<5x16x16xf32, #tpu.memory_space<vmem>>, vector<1x16x16xf32>
    %133 = vector.shape_cast %132 : vector<1x16x16xf32> to vector<16x16xf32>
    %134 = vector.extract_strided_slice %112 {offsets = [0, 512], sizes = [16, 128], strides = [1, 1]} : vector<16x640xf32> to vector<16x128xf32>
    %cst_113 = arith.constant dense<0.000000e+00> : vector<16x128xf32>
    %135 = tpu.matmul %133, %134, %cst_113 {dimension_numbers = #tpu.dot_dimension_numbers<[1], [0], [0], [1], [0, 0, 1, 1], [], []>} : vector<16x16xf32>, vector<16x128xf32>, vector<16x128xf32> -> vector<16x128xf32>
    %136 = arith.addf %131, %135 : vector<16x128xf32>
    %c1_114 = arith.constant 1 : index
    %c1_115 = arith.constant 1 : index
    %c0_116 = arith.constant 0 : index
    %c0_117 = arith.constant 0 : index
    %137 = vector.load %arg4[%c1_114, %c1_115, %c0_116, %c0_117] : memref<2x2x1x128xf32, #tpu.memory_space<vmem>>, vector<1x1x1x128xf32>
    %138 = vector.shape_cast %137 : vector<1x1x1x128xf32> to vector<1x128xf32>
    %139 = vector.broadcast %138 : vector<1x128xf32> to vector<16x128xf32>
    %140 = arith.addf %136, %139 : vector<16x128xf32>
    %cst_118 = arith.constant 3.000000e-01 : f32
    %141 = vector.broadcast %cst_118 : f32 to vector<16x128xf32>
    %142 = arith.mulf %141, %140 : vector<16x128xf32>
    %143 = arith.addf %72, %142 : vector<16x128xf32>
    %c0_119 = arith.constant 0 : index
    %c0_120 = arith.constant 0 : index
    %c0_121 = arith.constant 0 : index
    %144 = vector.load %arg5[%c0_119, %c0_120, %c0_121] : memref<1x16x128xf32, #tpu.memory_space<vmem>>, vector<1x16x128xf32>
    %145 = vector.shape_cast %144 : vector<1x16x128xf32> to vector<16x128xf32>
    %146 = vector.shape_cast %143 : vector<16x128xf32> to vector<1x16x128xf32>
    tpu.vector_store %arg5[%c0_119, %c0_120, %c0_121], %146 {strides = array<i32>} : memref<1x16x128xf32, #tpu.memory_space<vmem>>, vector<1x16x128xf32>,
    return
  }
  func.func @transform_0(%arg0: i32) -> (i32, i32, i32) {
    %c0_i32 = arith.constant 0 : i32
    %c0_i32_0 = arith.constant 0 : i32
    %c0_i32_1 = arith.constant 0 : i32
    return %arg0, %c0_i32, %c0_i32_0 : i32, i32, i32
  }
  func.func @transform_1(%arg0: i32) -> (i32, i32, i32) {
    %c0_i32 = arith.constant 0 : i32
    %c0_i32_0 = arith.constant 0 : i32
    %c0_i32_1 = arith.constant 0 : i32
    %c0_i32_2 = arith.constant 0 : i32
    return %c0_i32, %c0_i32_0, %c0_i32_1 : i32, i32, i32
  }
  func.func @transform_2(%arg0: i32) -> (i32, i32, i32, i32) {
    %c0_i32 = arith.constant 0 : i32
    %c0_i32_0 = arith.constant 0 : i32
    %c0_i32_1 = arith.constant 0 : i32
    %c0_i32_2 = arith.constant 0 : i32
    %c0_i32_3 = arith.constant 0 : i32
    return %c0_i32, %c0_i32_0, %c0_i32_1, %c0_i32_2 : i32, i32, i32, i32
  }
  func.func @transform_3(%arg0: i32) -> (i32, i32, i32, i32) {
    %c0_i32 = arith.constant 0 : i32
    %c0_i32_0 = arith.constant 0 : i32
    %c0_i32_1 = arith.constant 0 : i32
    %c0_i32_2 = arith.constant 0 : i32
    %c0_i32_3 = arith.constant 0 : i32
    return %c0_i32, %c0_i32_0, %c0_i32_1, %c0_i32_2 : i32, i32, i32, i32
  }
  func.func @transform_4(%arg0: i32) -> (i32, i32, i32) {
    %c0_i32 = arith.constant 0 : i32
    %c0_i32_0 = arith.constant 0 : i32
    %c0_i32_1 = arith.constant 0 : i32
    return %arg0, %c0_i32, %c0_i32_0 : i32, i32, i32
  }
}

</mosaic_0001>

<bundles_post_ra>
// kernel: discriminator_pallas.1
= control target key start
LH: loop header
LB: loop body
LE: loop exit
PB: predicated region body
PF: predicated region fallthrough
CT: control target
= control target key end

     0   :  { %v4113_v1 = vmov 0   ;;  %v4114_v39 = vmov 0.0   ;;  %vm4115_vm0 = vmmov 0   ;;  %vm411_vm1 = vcmask 130048   ;;  %s4837_s2 = inlined_call_operand.vmem [shape: bf16[2,2,128,640], index: 2, kind: input, shape index: {}]   ;;  %s4838_s0 = inlined_call_operand.vmem [shape: f32[1,16,128], index: 0, kind: input, shape index: {}]   ;;  %s4839_s1 = inlined_call_operand.vmem [shape: f32[5,16,16], index: 1, kind: input, shape index: {}]   ;;  %s4840_s3 = inlined_call_operand.vmem [shape: f32[2,2,1,128], index: 3, kind: input, shape index: {}]   ;;  %s4841_s4 = inlined_call_operand.vmem [shape: f32[1,16,128], index: 4, kind: output, shape index: {}]  }
   0x1   :  { %v3887_v0 = vld [vmem:[%s4837_s2 + $0x11c] ss:$20 sps:$4 sm:$0xff]   ;;  %311 = vmatprep.mubr.bf16.mxu0 %v4113_v1  ;;  %354 = vmatprep.mubr.bf16.mxu1 %v4113_v1  ;;  %v3889_v2 = vld [vmem:[%s4837_s2 + $0x118] ss:$20 sps:$4 sm:$0xff]   ;;  %v3890_v3 = vld [vmem:[%s4837_s2 + $0xf4] ss:$20 sps:$4 sm:$0xff]  }
   0x2   :  { %279 = vmatprep.subr.bf16.mxu0 %v3887_v0  ;;  %v3892_v4 = vld [vmem:[%s4837_s2 + $0xf0] ss:$20 sps:$4 sm:$0xff]   ;;  %v3893_v5 = vld [vmem:[%s4837_s2 + $0xcc] ss:$20 sps:$4 sm:$0xff]   ;;  %v3895_v8 = vld [vmem:[%s4837_s2 + $0xc8] ss:$20 sps:$4 sm:$0xff]  }
   0x3   :  { %280 = vmatpush1.bf16.msra.mxu0 %v3889_v2  ;;  %v3899_v6 = vld [vmem:[%s4837_s2 + $0x124] ss:$20 sps:$4 sm:$0xff]   ;;  %v3901_v7 = vld [vmem:[%s4837_s2 + $0x120] ss:$20 sps:$4 sm:$0xff]   ;;  %v3905_v10 = vld [vmem:[%s4837_s2 + $0xfc] ss:$20 sps:$4 sm:$0xff]  }
   0x4   :  { %281 = vmatprep.subr.bf16.mxu0 %v3890_v3  ;;  %v3896_v9 = vld [vmem:[%s4837_s2 + $0xa4] ss:$20 sps:$4 sm:$0xff]   ;;  %322 = vmatprep.subr.bf16.mxu1 %v3899_v6  ;;  %v3898_v12 = vld [vmem:[%s4837_s2 + $0xa0] ss:$20 sps:$4 sm:$0xff]   ;;  %v3902_v14 = vld [vmem:[%s4837_s2 + $0x7c] ss:$20 sps:$4 sm:$0xff]  }
   0x5   :  { %323 = vmatpush1.bf16.msra.mxu1 %v3901_v7  ;;  %v3907_v11 = vld [vmem:[%s4837_s2 + $0xf8] ss:$20 sps:$4 sm:$0xff]   ;;  %v3911_v13 = vld [vmem:[%s4837_s2 + $0xd4] ss:$20 sps:$4 sm:$0xff]   ;;  %v3913_v15 = vld [vmem:[%s4837_s2 + $0xd0] ss:$20 sps:$4 sm:$0xff]  }
   0x6   :  { %324 = vmatprep.subr.bf16.mxu1 %v3905_v10  ;;  %v3917_v16 = vld [vmem:[%s4837_s2 + $0xac] ss:$20 sps:$4 sm:$0xff]   ;;  %v3908_v18 = vld [vmem:[%s4837_s2 + $0x54] ss:$20 sps:$4 sm:$0xff]   ;;  %v3910_v19 = vld [vmem:[%s4837_s2 + $0x50] ss:$20 sps:$4 sm:$0xff]  }
   0x7   :  { %282 = vmatpush1.bf16.msra.mxu0 %v3892_v4  ;;  %v3904_v17 = vld [vmem:[%s4837_s2 + $0x78] ss:$20 sps:$4 sm:$0xff]   ;;  %v3919_v20 = vld [vmem:[%s4837_s2 + $0xa8] ss:$20 sps:$4 sm:$0xff]   ;;  %v3925_v23 = vld [vmem:[%s4837_s2 + $0x80] ss:$20 sps:$4 sm:$0xff]  }
   0x8   :  { %283 = vmatprep.subr.bf16.mxu0 %v3893_v5  ;;  %v3914_v21 = vld [vmem:[%s4837_s2 + $0x2c] ss:$20 sps:$4 sm:$0xff]   ;;  %v3923_v22 = vld [vmem:[%s4837_s2 + $0x84] ss:$20 sps:$4 sm:$0xff]   ;;  %v3926_v26 = vld [vmem:[%s4837_s2 + $0x5c] ss:$20 sps:$4 sm:$0xff]  }
   0x9   :  { %325 = vmatpush1.bf16.msra.mxu1 %v3907_v11  ;;  %v18_v24 = vld [vmem:[%s4838_s0] sm:$0xff]  ;;  %v19_v25 = vld [vmem:[%s4838_s0 + $0x8] sm:$0xff]  ;;  %v4283_v47 = vld [vmem:[%s4839_s1 + $0x10] sm:$0xff] }
   0xa   :  { %326 = vmatprep.subr.bf16.mxu1 %v3911_v13  ;;  %v3916_v27 = vld [vmem:[%s4837_s2 + $0x28] ss:$20 sps:$4 sm:$0xff]   ;;  %v3920_v28 = vld [vmem:[%s4837_s2 + $0x4] ss:$20 sps:$4 sm:$0xff]   ;;  %v20_v29 = vmax.f32 %v18_v24, 0.0  ;;  %v21_v30 = vmax.f32 %v19_v25, 0.0 }
   0xb   :  { %284 = vmatpush1.bf16.msra.mxu0 %v3895_v8  ;;  %v3929_v31 = vld [vmem:[%s4837_s2 + $0x58] ss:$20 sps:$4 sm:$0xff]   ;;  %v3930_v32 = vld [vmem:[%s4837_s2 + $0x34] ss:$20 sps:$4 sm:$0xff]   ;;  %v3933_v34 = vld [vmem:[%s4837_s2 + $0x30] ss:$20 sps:$4 sm:$0xff]  }
   0xc   :  { %285 = vmatprep.subr.bf16.mxu0 %v3896_v9  ;;  %v3922_v33 = vld [vmem:[%s4837_s2] ss:$20 sps:$4 sm:$0xff]   ;;  %v3928_v35 = vld [vmem:[%s4837_s2 + $0x128] ss:$20 sps:$4 sm:$0xff]   ;;  %v22_v37 = vpack.c.bf16 %v21_v30, %v20_v29  ;;  %v3936_v41 = vld [vmem:[%s4837_s2 + $0xd8] ss:$20 sps:$4 sm:$0xff]  }
   0xd   :  { %327 = vmatpush1.bf16.msra.mxu1 %v3913_v15  ;;  %v3934_v36 = vld [vmem:[%s4837_s2 + $0xc] ss:$20 sps:$4 sm:$0xff]   ;;  %v3937_v38 = vld [vmem:[%s4837_s2 + $0x8] ss:$20 sps:$4 sm:$0xff]   ;;  %v3938_v42 = vld [vmem:[%s4837_s2 + $0xb0] ss:$20 sps:$4 sm:$0xff]  }
   0xe   :  { %328 = vmatprep.subr.bf16.mxu1 %v3917_v16  ;;  %v3932_v40 = vld [vmem:[%s4837_s2 + $0x100] ss:$20 sps:$4 sm:$0xff]   ;;  %v3939_v43 = vld [vmem:[%s4837_s2 + $0x88] ss:$20 sps:$4 sm:$0xff]   ;;  %v3941_v45 = vld [vmem:[%s4837_s2 + $0x38] ss:$20 sps:$4 sm:$0xff]  }
   0xf   :  { %286 = vmatpush1.bf16.msra.mxu0 %v3898_v12  ;;  %v3940_v44 = vld [vmem:[%s4837_s2 + $0x60] ss:$20 sps:$4 sm:$0xff]   ;;  %v3942_v46 = vld [vmem:[%s4837_s2 + $0x10] ss:$20 sps:$4 sm:$0xff]   ;;  %v4290_v53 = vld [vmem:[%s4839_s1 + $0x18] sm:$0xff] }
  0x10   :  { %287 = vmatprep.subr.bf16.mxu0 %v3902_v14  ;;  %v4295_v55 = vld [vmem:[%s4839_s1] sm:$0xff]  ;;  %v4304_v57 = vld [vmem:[%s4839_s1 + $0x8] sm:$0xff]  ;;  %v4323_v61 = vld [vmem:[%s4839_s1 + $0x30] sm:$0xff] }
  0x11   :  { %329 = vmatpush1.bf16.msra.mxu1 %v3919_v20  ;;  %v4309_v58 = vld [vmem:[%s4839_s1 + $0x20] sm:$0xff]  ;;  %v4318_v60 = vld [vmem:[%s4839_s1 + $0x28] sm:$0xff]  ;;  %v4332_v62 = vld [vmem:[%s4839_s1 + $0x38] sm:$0xff] }
  0x12   :  { %330 = vmatprep.subr.bf16.mxu1 %v3923_v22  ;;  %v4337_v63 = vld [vmem:[%s4839_s1 + $0x40] sm:$0xff]  ;;  %v4346_v5 = vld [vmem:[%s4839_s1 + $0x48] sm:$0xff]  ;;  %v3945_v7 = vld [vmem:[%s4837_s2 + $0x25c] ss:$20 sps:$4 sm:$0xff]  }
  0x13   :  { %288 = vmatpush1.bf16.msra.mxu0 %v3904_v17  ;;  %v3943_v6 = vld [vmem:[%s4837_s2 + $0x258] ss:$20 sps:$4 sm:$0xff]   ;;  %v3946_v8 = vld [vmem:[%s4837_s2 + $0x260] ss:$20 sps:$4 sm:$0xff]   ;;  %v3949_v10 = vld [vmem:[%s4837_s2 + $0x230] ss:$20 sps:$4 sm:$0xff]  }
  0x14   :  { %289 = vmatprep.subr.bf16.mxu0 %v3908_v18  ;;  %v3948_v9 = vld [vmem:[%s4837_s2 + $0x264] ss:$20 sps:$4 sm:$0xff]   ;;  %v3951_v11 = vld [vmem:[%s4837_s2 + $0x234] ss:$20 sps:$4 sm:$0xff]   ;;  %v3954_v13 = vld [vmem:[%s4837_s2 + $0x23c] ss:$20 sps:$4 sm:$0xff]  }
  0x15   :  { %331 = vmatpush1.bf16.msra.mxu1 %v3925_v23  ;;  %v3952_v12 = vld [vmem:[%s4837_s2 + $0x238] ss:$20 sps:$4 sm:$0xff]   ;;  %v3955_v14 = vld [vmem:[%s4837_s2 + $0x208] ss:$20 sps:$4 sm:$0xff]   ;;  %v3958_v16 = vld [vmem:[%s4837_s2 + $0x210] ss:$20 sps:$4 sm:$0xff]  }
  0x16   :  { %332 = vmatprep.subr.bf16.mxu1 %v3926_v26  ;;  %v3957_v15 = vld [vmem:[%s4837_s2 + $0x20c] ss:$20 sps:$4 sm:$0xff]   ;;  %v3960_v17 = vld [vmem:[%s4837_s2 + $0x214] ss:$20 sps:$4 sm:$0xff]   ;;  %v3963_v18 = vld [vmem:[%s4837_s2 + $0x1e4] ss:$20 sps:$4 sm:$0xff]  }
  0x17   :  { %290 = vmatpush1.bf16.msra.mxu0 %v3910_v19  ;;  %v3961_v19 = vld [vmem:[%s4837_s2 + $0x1e0] ss:$20 sps:$4 sm:$0xff]   ;;  %v3969_v22 = vld [vmem:[%s4837_s2 + $0x1bc] ss:$20 sps:$4 sm:$0xff]   ;;  %v3972_v23 = vld [vmem:[%s4837_s2 + $0x1c4] ss:$20 sps:$4 sm:$0xff]  }
  0x18   :  { %291 = vmatprep.subr.bf16.mxu0 %v3914_v21  ;;  %v3966_v20 = vld [vmem:[%s4837_s2 + $0x1ec] ss:$20 sps:$4 sm:$0xff]   ;;  %v3964_v21 = vld [vmem:[%s4837_s2 + $0x1e8] ss:$20 sps:$4 sm:$0xff]  }
  0x19   :  { %333 = vmatpush1.bf16.msra.mxu1 %v3929_v31  ;;  %v3967_v24 = vld [vmem:[%s4837_s2 + $0x1b8] ss:$20 sps:$4 sm:$0xff]   ;;  %v3970_v25 = vld [vmem:[%s4837_s2 + $0x1c0] ss:$20 sps:$4 sm:$0xff]   ;;  %v3979_v31 = vld [vmem:[%s4837_s2 + $0x168] ss:$20 sps:$4 sm:$0xff]  }
  0x1a   :  { %334 = vmatprep.subr.bf16.mxu1 %v3930_v32  ;;  %v3975_v26 = vld [vmem:[%s4837_s2 + $0x194] ss:$20 sps:$4 sm:$0xff]   ;;  %v3976_v29 = vld [vmem:[%s4837_s2 + $0x198] ss:$20 sps:$4 sm:$0xff]  }
  0x1b   :  { %292 = vmatpush1.bf16.msra.mxu0 %v3916_v27  ;;  %v3978_v27 = vld [vmem:[%s4837_s2 + $0x19c] ss:$20 sps:$4 sm:$0xff]   ;;  %v3981_v30 = vld [vmem:[%s4837_s2 + $0x16c] ss:$20 sps:$4 sm:$0xff]   ;;  %v3984_v32 = vld [vmem:[%s4837_s2 + $0x174] ss:$20 sps:$4 sm:$0xff]  }
  0x1c   :  { %293 = vmatprep.subr.bf16.mxu0 %v3920_v28  ;;  %v3973_v28 = vld [vmem:[%s4837_s2 + $0x190] ss:$20 sps:$4 sm:$0xff]  }
  0x1d   :  { %335 = vmatpush1.bf16.msra.mxu1 %v3933_v34  ;;  %v3987_v34 = vld [vmem:[%s4837_s2 + $0x144] ss:$20 sps:$4 sm:$0xff]  }
  0x1e   :  { %336 = vmatprep.subr.bf16.mxu1 %v3934_v36  ;;  %v3990_v36 = vld [vmem:[%s4837_s2 + $0x14c] ss:$20 sps:$4 sm:$0xff]  }
  0x1f   :  { %294 = vmatpush1.bf16.msra.mxu0 %v3922_v33  ;;  %v3982_v33 = vld [vmem:[%s4837_s2 + $0x170] ss:$20 sps:$4 sm:$0xff]  }
  0x20   :  { %3664 = vmatprep.subr.bf16.mxu0 %v4114_v39 }
  0x21   :  { %337 = vmatpush1.bf16.msra.mxu1 %v3937_v38 }
  0x22   :  { %312 = vmatmul.mubr.bf16.vlgmr.msra.gmra.mxu0 %v22_v37 }
  0x23   :  { %3665 = vmatpush3.bf16.msra.mxu0 %v3928_v35  ;;  %3680 = vmatprep.mubr.msk.bf16.mxu0 %vm4115_vm0, %v4114_v39  ;;  %v3985_v35 = vld [vmem:[%s4837_s2 + $0x140] ss:$20 sps:$4 sm:$0xff]  }
  0x24   :  { %3666 = vmatprep.subr.bf16.mxu0 %v4114_v39  ;;  %355 = vmatmul.mubr.bf16.vlgmr.msra.gmra.mxu1 %v22_v37 }
  0x25   :  { %3688 = vmatprep.mubr.msk.f32.mxu1 %vm411_vm1, %v4283_v47 }
  0x27   :  { %3667 = vmatpush3.bf16.msra.mxu0 %v3932_v40 }
  0x28   :  { %3668 = vmatprep.subr.bf16.mxu0 %v4114_v39 }
  0x2b   :  { %3669 = vmatpush3.bf16.msra.mxu0 %v3936_v41 }
  0x2c   :  { %3670 = vmatprep.subr.bf16.mxu0 %v4114_v39 }
  0x2f   :  { %3671 = vmatpush3.bf16.msra.mxu0 %v3938_v42 }
  0x30   :  { %3672 = vmatprep.subr.bf16.mxu0 %v4114_v39 }
  0x33   :  { %3673 = vmatpush3.bf16.msra.mxu0 %v3939_v43 }
  0x34   :  { %3674 = vmatprep.subr.bf16.mxu0 %v4114_v39 }
  0x37   :  { %3675 = vmatpush3.bf16.msra.mxu0 %v3940_v44 }
  0x38   :  { %3676 = vmatprep.subr.bf16.mxu0 %v4114_v39 }
  0x3b   :  { %3677 = vmatpush3.bf16.msra.mxu0 %v3941_v45 }
  0x3c   :  { %3678 = vmatprep.subr.bf16.mxu0 %v4114_v39 }
  0x3f   :  { %3679 = vmatpush3.bf16.msra.mxu0 %v3942_v46 }
  0x40   :  { %1144 = vmatprep.subr.bf16.mxu0 %v3948_v9  ;;  %v3991_v9 = vld [vmem:[%s4837_s2 + $0x268] ss:$20 sps:$4 sm:$0xff]  }
  0x42   :  { %3681 = vmatmul.mubr.bf16.vlgmr.msra.gmra.mxu0 %v22_v37  ;;  %v3988_v37 = vld [vmem:[%s4837_s2 + $0x148] ss:$20 sps:$4 sm:$0xff]  }
  0x43   :  { %1176 = vmatprep.mubr.bf16.mxu0 %v4113_v1  ;;  %1145 = vmatpush1.bf16.msra.mxu0 %v3946_v8 }
  0x44   :  { %1146 = vmatprep.subr.bf16.mxu0 %v3954_v13  ;;  %v3994_v13 = vld [vmem:[%s4837_s2 + $0x1f0] ss:$20 sps:$4 sm:$0xff]  }
  0x47   :  { %1147 = vmatpush1.bf16.msra.mxu0 %v3952_v12  ;;  %v3993_v12 = vld [vmem:[%s4837_s2 + $0x218] ss:$20 sps:$4 sm:$0xff]  }
  0x48   :  { %1148 = vmatprep.subr.bf16.mxu0 %v3960_v17  ;;  %v3998_v17 = vld [vmem:[%s4837_s2 + $0x150] ss:$20 sps:$4 sm:$0xff]  }
  0x4b   :  { %1149 = vmatpush1.bf16.msra.mxu0 %v3958_v16  ;;  %v3997_v16 = vld [vmem:[%s4837_s2 + $0x178] ss:$20 sps:$4 sm:$0xff]  }
  0x4c   :  { %1150 = vmatprep.subr.bf16.mxu0 %v3966_v20 }
  0x4f   :  { %1151 = vmatpush1.bf16.msra.mxu0 %v3964_v21 }
  0x50   :  { %1152 = vmatprep.subr.bf16.mxu0 %v3972_v23 }
  0x53   :  { %1153 = vmatpush1.bf16.msra.mxu0 %v3970_v25 }
  0x54   :  { %1154 = vmatprep.subr.bf16.mxu0 %v3978_v27 }
  0x57   :  { %1155 = vmatpush1.bf16.msra.mxu0 %v3976_v29 }
  0x58   :  { %1156 = vmatprep.subr.bf16.mxu0 %v3984_v32  ;;  %v4002_v32 = vld [vmem:[%s4837_s2 + $0x3a0] ss:$20 sps:$4 sm:$0xff]  }
  0x5b   :  { %1157 = vmatpush1.bf16.msra.mxu0 %v3982_v33  ;;  %v4004_v33 = vld [vmem:[%s4837_s2 + $0x3a4] ss:$20 sps:$4 sm:$0xff]  }
  0x5c   :  { %1158 = vmatprep.subr.bf16.mxu0 %v3990_v36  ;;  %v4008_v36 = vld [vmem:[%s4837_s2 + $0x378] ss:$20 sps:$4 sm:$0xff]  }
  0x5f   :  { %1159 = vmatpush1.bf16.msra.mxu0 %v3988_v37  ;;  %v4010_v37 = vld [vmem:[%s4837_s2 + $0x37c] ss:$20 sps:$4 sm:$0xff]  }
  0xe2   :  { %v313_v48 = vpop.f32.mrf.mxu0 }
  0xe4   :  { %v315_v49 = vpop.f32.mrf.mxu0  ;;  %v356_v52 = vpop.f32.mrf.mxu1 }
  0xe6   :  { %v317_v50 = vpop.f32.mrf.mxu0  ;;  %v358_v54 = vpop.f32.mrf.mxu1 }
  0xe8   :  { %v319_v51 = vpop.f32.mrf.mxu0  ;;  %v360_v56 = vpop.f32.mrf.mxu1 }
  0xe9   :  { %3684 = vmatprep.subr.mxu1 %v319_v51 }
  0xea   :  { %3685 = vmatpush3.msra.mxu1 %v319_v51  ;;  %v362_v59 = vpop.f32.mrf.mxu1 }
  0xeb   :  { %3686 = vmatprep.subr.mxu1 %v315_v49 }
  0xec   :  { %3687 = vmatpush3.msra.mxu1 %v315_v49 }
  0xed   :  { %3691 = vmatprep.subr.mxu1 %v317_v50  ;;  %3689 = vmatmul.mubr.msk.f32.vlgmr.msra.gmra.mxu1 %vm411_vm1, %v4290_v53 }
  0xee   :  { %3692 = vmatpush3.msra.mxu1 %v317_v50  ;;  %3695 = vmatprep.mubr.msk.f32.mxu1 %vm411_vm1, %v4295_v55 }
  0xef   :  { %3693 = vmatprep.subr.mxu1 %v313_v48 }
  0xf0   :  { %3694 = vmatpush3.msra.mxu1 %v313_v48 }
  0xf1   :  { %3698 = vmatprep.subr.mxu1 %v360_v56  ;;  %3696 = vmatmul.mubr.msk.f32.vlgmr.msra.gmra.mxu1 %vm411_vm1, %v4304_v57 }
  0xf2   :  { %3699 = vmatpush3.msra.mxu1 %v360_v56  ;;  %3702 = vmatprep.mubr.msk.f32.mxu1 %vm411_vm1, %v4309_v58  ;;  %v3247_v56 = vld [vmem:[%s4840_s3] ss:$0 sm:$0xff] }
  0xf3   :  { %3700 = vmatprep.subr.mxu1 %v356_v52 }
  0xf4   :  { %3701 = vmatpush3.msra.mxu1 %v356_v52 }
  0xf5   :  { %3705 = vmatprep.subr.mxu1 %v362_v59  ;;  %3703 = vmatmul.mubr.msk.f32.vlgmr.msra.gmra.mxu1 %vm411_vm1, %v4318_v60 }
  0xf6   :  { %3706 = vmatpush3.msra.mxu1 %v362_v59  ;;  %3709 = vmatprep.mubr.msk.f32.mxu1 %vm411_vm1, %v4323_v61 }
  0xf7   :  { %3707 = vmatprep.subr.mxu1 %v358_v54 }
  0xf8   :  { %3708 = vmatpush3.msra.mxu1 %v358_v54 }
  0xf9   :  { %3710 = vmatmul.mubr.msk.f32.vlgmr.msra.gmra.mxu1 %vm411_vm1, %v4332_v62 }
  0xfa   :  { %3716 = vmatprep.mubr.msk.f32.mxu1 %vm411_vm1, %v4337_v63 }
 0x102   :  { %v399_v0 = vpop.f32.mrf.mxu0 }
 0x104   :  { %v3682_v2 = vpop.f32.mrf.mxu0 }
 0x106   :  { %v402_v3 = vpop.f32.mrf.mxu0 }
 0x107   :  { %3712 = vmatprep.subr.mxu1 %v402_v3 }
 0x108   :  { %v3683_v4 = vpop.f32.mrf.mxu0  ;;  %3713 = vmatpush3.msra.mxu1 %v402_v3 }
 0x109   :  { %3714 = vmatprep.subr.mxu1 %v399_v0 }
 0x10a   :  { %3715 = vmatpush3.msra.mxu1 %v399_v0 }
 0x10b   :  { %3717 = vmatmul.mubr.msk.f32.vlgmr.msra.gmra.mxu1 %vm411_vm1, %v4346_v5  ;;  %1101 = vmatprep.subr.bf16.mxu1 %v3945_v7 }
 0x10c   :  { %1133 = vmatprep.mubr.bf16.mxu1 %v4113_v1  ;;  %1102 = vmatpush1.bf16.msra.mxu1 %v3943_v6 }
 0x10d   :  { %1103 = vmatprep.subr.bf16.mxu1 %v3951_v11  ;;  %v3992_v11 = vld [vmem:[%s4837_s2 + $0x240] ss:$20 sps:$4 sm:$0xff]  }
 0x110   :  { %1104 = vmatpush1.bf16.msra.mxu1 %v3949_v10 }
 0x111   :  { %1105 = vmatprep.subr.bf16.mxu1 %v3957_v15  ;;  %v3996_v15 = vld [vmem:[%s4837_s2 + $0x1a0] ss:$20 sps:$4 sm:$0xff]  }
 0x114   :  { %1106 = vmatpush1.bf16.msra.mxu1 %v3955_v14  ;;  %v3995_v14 = vld [vmem:[%s4837_s2 + $0x1c8] ss:$20 sps:$4 sm:$0xff]  }
 0x115   :  { %1107 = vmatprep.subr.bf16.mxu1 %v3963_v18 }
 0x118   :  { %1108 = vmatpush1.bf16.msra.mxu1 %v3961_v19 }
 0x119   :  { %1109 = vmatprep.subr.bf16.mxu1 %v3969_v22 }
 0x11c   :  { %1110 = vmatpush1.bf16.msra.mxu1 %v3967_v24 }
 0x11d   :  { %1111 = vmatprep.subr.bf16.mxu1 %v3975_v26 }
 0x120   :  { %1112 = vmatpush1.bf16.msra.mxu1 %v3973_v28 }
 0x121   :  { %1113 = vmatprep.subr.bf16.mxu1 %v3981_v30  ;;  %v3999_v30 = vld [vmem:[%s4837_s2 + $0x398] ss:$20 sps:$4 sm:$0xff]  }
 0x124   :  { %1114 = vmatpush1.bf16.msra.mxu1 %v3979_v31  ;;  %v4001_v31 = vld [vmem:[%s4837_s2 + $0x39c] ss:$20 sps:$4 sm:$0xff]  }
 0x125   :  { %1115 = vmatprep.subr.bf16.mxu1 %v3987_v34  ;;  %v4005_v34 = vld [vmem:[%s4837_s2 + $0x370] ss:$20 sps:$4 sm:$0xff]  }
 0x128   :  { %1116 = vmatpush1.bf16.msra.mxu1 %v3985_v35  ;;  %v4007_v35 = vld [vmem:[%s4837_s2 + $0x374] ss:$20 sps:$4 sm:$0xff]  }
 0x129   :  { %3719 = vmatprep.subr.bf16.mxu1 %v4114_v39 }
 0x1ad   :  { %v3690_v38 = vpop.f32.mrf.mxu1 }
 0x1af   :  { %v484_v40 = vpop.f32.mrf.mxu1 }
 0x1b1   :  { %v3697_v41 = vpop.f32.mrf.mxu1 }
 0x1b2   :  { %v571_v45 = vadd.f32 %v3697_v41, %v3690_v38  ;;  %v4013_v38 = vld [vmem:[%s4837_s2 + $0x34c] ss:$20 sps:$4 sm:$0xff]   ;;  %v4016_v41 = vld [vmem:[%s4837_s2 + $0x354] ss:$20 sps:$4 sm:$0xff]  }
 0x1b3   :  { %v565_v42 = vpop.f32.mrf.mxu1 }
 0x1b4   :  { %v566_v46 = vadd.f32 %v565_v42, %v484_v40  ;;  %v4011_v40 = vld [vmem:[%s4837_s2 + $0x348] ss:$20 sps:$4 sm:$0xff]   ;;  %v4014_v42 = vld [vmem:[%s4837_s2 + $0x350] ss:$20 sps:$4 sm:$0xff]  }
 0x1b5   :  { %v3704_v43 = vpop.f32.mrf.mxu1 }
 0x1b6   :  { %v659_v49 = vadd.f32 %v3704_v43, %v571_v45  ;;  %v4019_v43 = vld [vmem:[%s4837_s2 + $0x324] ss:$20 sps:$4 sm:$0xff]   ;;  %v4017_v45 = vld [vmem:[%s4837_s2 + $0x320] ss:$20 sps:$4 sm:$0xff]  }
 0x1b7   :  { %v649_v44 = vpop.f32.mrf.mxu1 }
 0x1b8   :  { %v658_v50 = vadd.f32 %v649_v44, %v566_v46  ;;  %v4022_v44 = vld [vmem:[%s4837_s2 + $0x32c] ss:$20 sps:$4 sm:$0xff]   ;;  %v4020_v46 = vld [vmem:[%s4837_s2 + $0x328] ss:$20 sps:$4 sm:$0xff]  }
 0x1b9   :  { %v3711_v48 = vpop.f32.mrf.mxu1 }
 0x1ba   :  { %v745_v52 = vadd.f32 %v3711_v48, %v659_v49  ;;  %v4025_v48 = vld [vmem:[%s4837_s2 + $0x2fc] ss:$20 sps:$4 sm:$0xff]   ;;  %v4028_v49 = vld [vmem:[%s4837_s2 + $0x304] ss:$20 sps:$4 sm:$0xff]  }
 0x1bb   :  { %v735_v51 = vpop.f32.mrf.mxu1 }
 0x1bc   :  { %v744_v59 = vadd.f32 %v735_v51, %v658_v50  ;;  %v4023_v50 = vld [vmem:[%s4837_s2 + $0x2f8] ss:$20 sps:$4 sm:$0xff]   ;;  %v4026_v51 = vld [vmem:[%s4837_s2 + $0x300] ss:$20 sps:$4 sm:$0xff]  }
 0x1cb   :  { %v3718_v54 = vpop.f32.mrf.mxu1 }
 0x1cc   :  { %v831_v0 = vadd.f32 %v3718_v54, %v745_v52  ;;  %v4031_v52 = vld [vmem:[%s4837_s2 + $0x2d4] ss:$20 sps:$4 sm:$0xff]   ;;  %v4029_v54 = vld [vmem:[%s4837_s2 + $0x2d0] ss:$20 sps:$4 sm:$0xff]  }
 0x1cd   :  { %v821_v2 = vpop.f32.mrf.mxu1 }
 0x1ce   :  { %v840_v3 = vadd.f32 %v3247_v56, %v831_v0  ;;  %v830_v4 = vadd.f32 %v821_v2, %v744_v59  ;;  %v4032_v59 = vld [vmem:[%s4837_s2 + $0x2d8] ss:$20 sps:$4 sm:$0xff]   ;;  %v4035_v2 = vld [vmem:[%s4837_s2 + $0x2a8] ss:$20 sps:$4 sm:$0xff]  }
 0x1cf   :  { %v4037_v0 = vld [vmem:[%s4837_s2 + $0x2ac] ss:$20 sps:$4 sm:$0xff]  }
 0x1d0   :  { %v839_v6 = vadd.f32 %v3247_v56, %v830_v4  ;;  %v842_v7 = vmax.f32 %v840_v3, 0.0  ;;  %v4034_v56 = vld [vmem:[%s4837_s2 + $0x2dc] ss:$20 sps:$4 sm:$0xff]   ;;  %v4040_v3 = vld [vmem:[%s4837_s2 + $0x2b4] ss:$20 sps:$4 sm:$0xff]  }
 0x1d1   :  { %v4038_v4 = vld [vmem:[%s4837_s2 + $0x2b0] ss:$20 sps:$4 sm:$0xff]  }
 0x1d2   :  { %v841_v8 = vmax.f32 %v839_v6, 0.0  ;;  %v4043_v6 = vld [vmem:[%s4837_s2 + $0x284] ss:$20 sps:$4 sm:$0xff]  }
 0x1d4   :  { %v843_v10 = vpack.c.bf16 %v842_v7, %v841_v8  ;;  %v4041_v7 = vld [vmem:[%s4837_s2 + $0x280] ss:$20 sps:$4 sm:$0xff]  }
 0x1d5   :  { %v4046_v8 = vld [vmem:[%s4837_s2 + $0x28c] ss:$20 sps:$4 sm:$0xff]  }
 0x1d6   :  { %1134 = vmatmul.mubr.bf16.vlgmr.msra.gmra.mxu1 %v843_v10  ;;  %1177 = vmatmul.mubr.bf16.vlgmr.msra.gmra.mxu0 %v843_v10 }
 0x1d7   :  { %3720 = vmatpush3.bf16.msra.mxu1 %v3991_v9  ;;  %3735 = vmatprep.mubr.msk.bf16.mxu1 %vm4115_vm0, %v4114_v39  ;;  %v4044_v9 = vld [vmem:[%s4837_s2 + $0x288] ss:$20 sps:$4 sm:$0xff]  }
 0x1d8   :  { %3721 = vmatprep.subr.bf16.mxu1 %v4114_v39  ;;  %3743 = vmatprep.mubr.msk.f32.mxu0 %vm411_vm1, %v4283_v47 }
 0x1db   :  { %3722 = vmatpush3.bf16.msra.mxu1 %v3992_v11 }
 0x1dc   :  { %3723 = vmatprep.subr.bf16.mxu1 %v4114_v39 }
 0x1df   :  { %3724 = vmatpush3.bf16.msra.mxu1 %v3993_v12 }
 0x1e0   :  { %3725 = vmatprep.subr.bf16.mxu1 %v4114_v39 }
 0x1e3   :  { %3726 = vmatpush3.bf16.msra.mxu1 %v3994_v13 }
 0x1e4   :  { %3727 = vmatprep.subr.bf16.mxu1 %v4114_v39 }
 0x1e7   :  { %3728 = vmatpush3.bf16.msra.mxu1 %v3995_v14 }
 0x1e8   :  { %3729 = vmatprep.subr.bf16.mxu1 %v4114_v39 }
 0x1eb   :  { %3730 = vmatpush3.bf16.msra.mxu1 %v3996_v15 }
 0x1ec   :  { %3731 = vmatprep.subr.bf16.mxu1 %v4114_v39 }
 0x1ef   :  { %3732 = vmatpush3.bf16.msra.mxu1 %v3997_v16 }
 0x1f0   :  { %3733 = vmatprep.subr.bf16.mxu1 %v4114_v39 }
 0x1f3   :  { %3734 = vmatpush3.bf16.msra.mxu1 %v3998_v17 }
 0x1f4   :  { %1926 = vmatprep.subr.bf16.mxu1 %v4004_v33 }
 0x1f6   :  { %3736 = vmatmul.mubr.bf16.vlgmr.msra.gmra.mxu1 %v843_v10 }
 0x1f7   :  { %1958 = vmatprep.mubr.bf16.mxu1 %v4113_v1  ;;  %1927 = vmatpush1.bf16.msra.mxu1 %v4002_v32  ;;  %v4111_v32 = vld [vmem:[%s4838_s0 + $0x8] sm:$0xff] }
 0x1f8   :  { %1928 = vmatprep.subr.bf16.mxu1 %v4010_v37 }
 0x1fb   :  { %1929 = vmatpush1.bf16.msra.mxu1 %v4008_v36 }
 0x1fc   :  { %1930 = vmatprep.subr.bf16.mxu1 %v4016_v41 }
 0x1ff   :  { %1931 = vmatpush1.bf16.msra.mxu1 %v4014_v42  ;;  %v4048_v42 = vld [vmem:[%s4837_s2 + $0x380] ss:$20 sps:$4 sm:$0xff]  }
 0x200   :  { %1932 = vmatprep.subr.bf16.mxu1 %v4022_v44  ;;  %v4050_v44 = vld [vmem:[%s4837_s2 + $0x330] ss:$20 sps:$4 sm:$0xff]  }
 0x203   :  { %1933 = vmatpush1.bf16.msra.mxu1 %v4020_v46  ;;  %v4052_v46 = vld [vmem:[%s4837_s2 + $0x2e0] ss:$20 sps:$4 sm:$0xff]  }
 0x204   :  { %1934 = vmatprep.subr.bf16.mxu1 %v4028_v49  ;;  %v4054_v49 = vld [vmem:[%s4837_s2 + $0x290] ss:$20 sps:$4 sm:$0xff]  }
 0x207   :  { %1935 = vmatpush1.bf16.msra.mxu1 %v4026_v51 }
 0x208   :  { %1936 = vmatprep.subr.bf16.mxu1 %v4034_v56 }
 0x20b   :  { %1937 = vmatpush1.bf16.msra.mxu1 %v4032_v59 }
 0x20c   :  { %1938 = vmatprep.subr.bf16.mxu1 %v4040_v3 }
 0x20f   :  { %1939 = vmatpush1.bf16.msra.mxu1 %v4038_v4 }
 0x210   :  { %1940 = vmatprep.subr.bf16.mxu1 %v4046_v8  ;;  %v4055_v8 = vld [vmem:[%s4837_s2 + $0x4d8] ss:$20 sps:$4 sm:$0xff]  }
 0x213   :  { %1941 = vmatpush1.bf16.msra.mxu1 %v4044_v9  ;;  %v4057_v9 = vld [vmem:[%s4837_s2 + $0x4dc] ss:$20 sps:$4 sm:$0xff]  }
 0x296   :  { %v1135_v18 = vpop.f32.mrf.mxu1  ;;  %v1178_v21 = vpop.f32.mrf.mxu0 }
 0x298   :  { %v1137_v19 = vpop.f32.mrf.mxu1  ;;  %v1180_v23 = vpop.f32.mrf.mxu0 }
 0x29a   :  { %v1139_v20 = vpop.f32.mrf.mxu1  ;;  %v1182_v24 = vpop.f32.mrf.mxu0 }
 0x29c   :  { %v1141_v22 = vpop.f32.mrf.mxu1  ;;  %v1184_v25 = vpop.f32.mrf.mxu0 }
 0x29d   :  { %3739 = vmatprep.subr.mxu0 %v1141_v22 }
 0x29e   :  { %3740 = vmatpush3.msra.mxu0 %v1141_v22 }
 0x29f   :  { %3741 = vmatprep.subr.mxu0 %v1137_v19 }
 0x2a0   :  { %3742 = vmatpush3.msra.mxu0 %v1137_v19 }
 0x2a1   :  { %3746 = vmatprep.subr.mxu0 %v1139_v20  ;;  %3744 = vmatmul.mubr.msk.f32.vlgmr.msra.gmra.mxu0 %vm411_vm1, %v4290_v53 }
 0x2a2   :  { %3747 = vmatpush3.msra.mxu0 %v1139_v20  ;;  %3750 = vmatprep.mubr.msk.f32.mxu0 %vm411_vm1, %v4295_v55 }
 0x2a3   :  { %3748 = vmatprep.subr.mxu0 %v1135_v18 }
 0x2a4   :  { %3749 = vmatpush3.msra.mxu0 %v1135_v18 }
 0x2a5   :  { %3753 = vmatprep.subr.mxu0 %v1182_v24  ;;  %3751 = vmatmul.mubr.msk.f32.vlgmr.msra.gmra.mxu0 %vm411_vm1, %v4304_v57 }
 0x2a6   :  { %3754 = vmatpush3.msra.mxu0 %v1182_v24  ;;  %3757 = vmatprep.mubr.msk.f32.mxu0 %vm411_vm1, %v4309_v58  ;;  %v3347_v24 = vld [vmem:[%s4840_s3 + $0x1] ss:$0 sm:$0xff] }
 0x2a7   :  { %3755 = vmatprep.subr.mxu0 %v1178_v21 }
 0x2a8   :  { %3756 = vmatpush3.msra.mxu0 %v1178_v21 }
 0x2a9   :  { %3760 = vmatprep.subr.mxu0 %v1184_v25  ;;  %3758 = vmatmul.mubr.msk.f32.vlgmr.msra.gmra.mxu0 %vm411_vm1, %v4318_v60 }
 0x2aa   :  { %3761 = vmatpush3.msra.mxu0 %v1184_v25  ;;  %3764 = vmatprep.mubr.msk.f32.mxu0 %vm411_vm1, %v4323_v61 }
 0x2ab   :  { %3762 = vmatprep.subr.mxu0 %v1180_v23 }
 0x2ac   :  { %3763 = vmatpush3.msra.mxu0 %v1180_v23 }
 0x2ad   :  { %3765 = vmatmul.mubr.msk.f32.vlgmr.msra.gmra.mxu0 %vm411_vm1, %v4332_v62 }
 0x2ae   :  { %3771 = vmatprep.mubr.msk.f32.mxu0 %vm411_vm1, %v4337_v63 }
 0x2b6   :  { %v1221_v26 = vpop.f32.mrf.mxu1 }
 0x2b8   :  { %v3737_v27 = vpop.f32.mrf.mxu1 }
 0x2ba   :  { %v1224_v28 = vpop.f32.mrf.mxu1 }
 0x2bb   :  { %3767 = vmatprep.subr.mxu0 %v1224_v28 }
 0x2bc   :  { %v3738_v29 = vpop.f32.mrf.mxu1  ;;  %3768 = vmatpush3.msra.mxu0 %v1224_v28 }
 0x2bd   :  { %3769 = vmatprep.subr.mxu0 %v1221_v26 }
 0x2be   :  { %3770 = vmatpush3.msra.mxu0 %v1221_v26 }
 0x2bf   :  { %3772 = vmatmul.mubr.msk.f32.vlgmr.msra.gmra.mxu0 %vm411_vm1, %v4346_v5  ;;  %1883 = vmatprep.subr.bf16.mxu0 %v4001_v31 }
 0x2c0   :  { %1915 = vmatprep.mubr.bf16.mxu0 %v4113_v1  ;;  %1884 = vmatpush1.bf16.msra.mxu0 %v3999_v30 }
 0x2c1   :  { %1885 = vmatprep.subr.bf16.mxu0 %v4007_v35  ;;  %v4112_v35 = vld [vmem:[%s4838_s0] sm:$0xff] }
 0x2c4   :  { %1886 = vmatpush1.bf16.msra.mxu0 %v4005_v34 }
 0x2c5   :  { %1887 = vmatprep.subr.bf16.mxu0 %v4013_v38 }
 0x2c8   :  { %1888 = vmatpush1.bf16.msra.mxu0 %v4011_v40  ;;  %v4047_v40 = vld [vmem:[%s4837_s2 + $0x3a8] ss:$20 sps:$4 sm:$0xff]  }
 0x2c9   :  { %1889 = vmatprep.subr.bf16.mxu0 %v4019_v43  ;;  %v4049_v43 = vld [vmem:[%s4837_s2 + $0x358] ss:$20 sps:$4 sm:$0xff]  }
 0x2cc   :  { %1890 = vmatpush1.bf16.msra.mxu0 %v4017_v45  ;;  %v4051_v45 = vld [vmem:[%s4837_s2 + $0x308] ss:$20 sps:$4 sm:$0xff]  }
 0x2cd   :  { %1891 = vmatprep.subr.bf16.mxu0 %v4025_v48  ;;  %v4053_v48 = vld [vmem:[%s4837_s2 + $0x2b8] ss:$20 sps:$4 sm:$0xff]  }
 0x2d0   :  { %1892 = vmatpush1.bf16.msra.mxu0 %v4023_v50 }
 0x2d1   :  { %1893 = vmatprep.subr.bf16.mxu0 %v4031_v52 }
 0x2d4   :  { %1894 = vmatpush1.bf16.msra.mxu0 %v4029_v54 }
 0x2d5   :  { %1895 = vmatprep.subr.bf16.mxu0 %v4037_v0 }
 0x2d8   :  { %1896 = vmatpush1.bf16.msra.mxu0 %v4035_v2 }
 0x2d9   :  { %1897 = vmatprep.subr.bf16.mxu0 %v4043_v6 }
 0x2dc   :  { %1898 = vmatpush1.bf16.msra.mxu0 %v4041_v7 }
 0x2dd   :  { %3774 = vmatprep.subr.bf16.mxu0 %v4114_v39 }
 0x361   :  { %v3745_v10 = vpop.f32.mrf.mxu0 }
 0x363   :  { %v1294_v11 = vpop.f32.mrf.mxu0 }
 0x365   :  { %v3752_v12 = vpop.f32.mrf.mxu0 }
 0x366   :  { %v1375_v16 = vadd.f32 %v3752_v12, %v3745_v10  ;;  %v4058_v10 = vld [vmem:[%s4837_s2 + $0x4e0] ss:$20 sps:$4 sm:$0xff]  }
 0x367   :  { %v1369_v13 = vpop.f32.mrf.mxu0  ;;  %v4063_v12 = vld [vmem:[%s4837_s2 + $0x4b4] ss:$20 sps:$4 sm:$0xff]  }
 0x368   :  { %v1370_v17 = vadd.f32 %v1369_v13, %v1294_v11  ;;  %v4060_v11 = vld [vmem:[%s4837_s2 + $0x4e4] ss:$20 sps:$4 sm:$0xff]  }
 0x369   :  { %v3759_v14 = vpop.f32.mrf.mxu0  ;;  %v4064_v13 = vld [vmem:[%s4837_s2 + $0x4b8] ss:$20 sps:$4 sm:$0xff]  }
 0x36a   :  { %v1454_v19 = vadd.f32 %v3759_v14, %v1375_v16  ;;  %v4066_v14 = vld [vmem:[%s4837_s2 + $0x4bc] ss:$20 sps:$4 sm:$0xff]   ;;  %v4069_v16 = vld [vmem:[%s4837_s2 + $0x48c] ss:$20 sps:$4 sm:$0xff]  }
 0x36b   :  { %v1444_v15 = vpop.f32.mrf.mxu0 }
 0x36c   :  { %v1453_v20 = vadd.f32 %v1444_v15, %v1370_v17  ;;  %v4067_v15 = vld [vmem:[%s4837_s2 + $0x488] ss:$20 sps:$4 sm:$0xff]   ;;  %v4070_v17 = vld [vmem:[%s4837_s2 + $0x490] ss:$20 sps:$4 sm:$0xff]  }
 0x36d   :  { %v3766_v18 = vpop.f32.mrf.mxu0 }
 0x36e   :  { %v1531_v22 = vadd.f32 %v3766_v18, %v1454_v19  ;;  %v4072_v18 = vld [vmem:[%s4837_s2 + $0x494] ss:$20 sps:$4 sm:$0xff]   ;;  %v4075_v19 = vld [vmem:[%s4837_s2 + $0x464] ss:$20 sps:$4 sm:$0xff]  }
 0x36f   :  { %v1521_v21 = vpop.f32.mrf.mxu0 }
 0x370   :  { %v1530_v25 = vadd.f32 %v1521_v21, %v1453_v20  ;;  %v4073_v20 = vld [vmem:[%s4837_s2 + $0x460] ss:$20 sps:$4 sm:$0xff]  }
 0x371   :  { %v4078_v21 = vld [vmem:[%s4837_s2 + $0x46c] ss:$20 sps:$4 sm:$0xff]  }
 0x37f   :  { %v3773_v23 = vpop.f32.mrf.mxu0 }
 0x380   :  { %v1608_v26 = vadd.f32 %v3773_v23, %v1531_v22  ;;  %v4076_v22 = vld [vmem:[%s4837_s2 + $0x468] ss:$20 sps:$4 sm:$0xff]  }
 0x381   :  { %v1598_v27 = vpop.f32.mrf.mxu0  ;;  %v4081_v23 = vld [vmem:[%s4837_s2 + $0x43c] ss:$20 sps:$4 sm:$0xff]  }
 0x382   :  { %v1618_v28 = vadd.f32 %v3347_v24, %v1608_v26  ;;  %v1607_v29 = vadd.f32 %v1598_v27, %v1530_v25  ;;  %v4079_v25 = vld [vmem:[%s4837_s2 + $0x438] ss:$20 sps:$4 sm:$0xff]   ;;  %v4082_v26 = vld [vmem:[%s4837_s2 + $0x440] ss:$20 sps:$4 sm:$0xff]  }
 0x383   :  { %v4087_v27 = vld [vmem:[%s4837_s2 + $0x414] ss:$20 sps:$4 sm:$0xff]  }
 0x384   :  { %v1620_v30 = vmul.f32 0.3, %v1618_v28  ;;  %v1617_v31 = vadd.f32 %v3347_v24, %v1607_v29  ;;  %v4084_v24 = vld [vmem:[%s4837_s2 + $0x444] ss:$20 sps:$4 sm:$0xff]   ;;  %v4090_v28 = vld [vmem:[%s4837_s2 + $0x41c] ss:$20 sps:$4 sm:$0xff]  }
 0x385   :  { %v4085_v29 = vld [vmem:[%s4837_s2 + $0x410] ss:$20 sps:$4 sm:$0xff]  }
 0x386   :  { %v4609_v33 = vadd.f32 %v4111_v32, %v1620_v30  ;;  %v1619_v34 = vmul.f32 0.3, %v1617_v31  ;;  %v4088_v30 = vld [vmem:[%s4837_s2 + $0x418] ss:$20 sps:$4 sm:$0xff]   ;;  %v4091_v32 = vld [vmem:[%s4837_s2 + $0x3e8] ss:$20 sps:$4 sm:$0xff]  }
 0x387   :  { %v4093_v31 = vld [vmem:[%s4837_s2 + $0x3ec] ss:$20 sps:$4 sm:$0xff]  }
 0x388   :  { %v4614_v36 = vadd.f32 %v4112_v35, %v1619_v34  ;;  %v1624_v37 = vmax.f32 %v4609_v33, 0.0  ;;  %v4096_v34 = vld [vmem:[%s4837_s2 + $0x3f4] ss:$20 sps:$4 sm:$0xff]   ;;  %v4094_v35 = vld [vmem:[%s4837_s2 + $0x3f0] ss:$20 sps:$4 sm:$0xff]  }
 0x38a   :  { %v1623_v38 = vmax.f32 %v4614_v36, 0.0 }
 0x38c   :  { %v1625_v41 = vpack.c.bf16 %v1624_v37, %v1623_v38  ;;  %v4099_v37 = vld [vmem:[%s4837_s2 + $0x3c4] ss:$20 sps:$4 sm:$0xff]   ;;  %v4097_v38 = vld [vmem:[%s4837_s2 + $0x3c0] ss:$20 sps:$4 sm:$0xff]  }
 0x38e   :  { %1916 = vmatmul.mubr.bf16.vlgmr.msra.gmra.mxu0 %v1625_v41  ;;  %1959 = vmatmul.mubr.bf16.vlgmr.msra.gmra.mxu1 %v1625_v41 }
 0x38f   :  { %3775 = vmatpush3.bf16.msra.mxu0 %v4047_v40  ;;  %3790 = vmatprep.mubr.msk.bf16.mxu0 %vm4115_vm0, %v4114_v39  ;;  %v4102_v40 = vld [vmem:[%s4837_s2 + $0x3cc] ss:$20 sps:$4 sm:$0xff]  }
 0x390   :  { %3776 = vmatprep.subr.bf16.mxu0 %v4114_v39  ;;  %3798 = vmatprep.mubr.msk.f32.mxu1 %vm411_vm1, %v4283_v47 }
 0x393   :  { %3777 = vmatpush3.bf16.msra.mxu0 %v4048_v42 }
 0x394   :  { %3778 = vmatprep.subr.bf16.mxu0 %v4114_v39 }
 0x397   :  { %3779 = vmatpush3.bf16.msra.mxu0 %v4049_v43 }
 0x398   :  { %3780 = vmatprep.subr.bf16.mxu0 %v4114_v39 }
 0x39b   :  { %3781 = vmatpush3.bf16.msra.mxu0 %v4050_v44 }
 0x39c   :  { %3782 = vmatprep.subr.bf16.mxu0 %v4114_v39 }
 0x39f   :  { %3783 = vmatpush3.bf16.msra.mxu0 %v4051_v45 }
 0x3a0   :  { %3784 = vmatprep.subr.bf16.mxu0 %v4114_v39 }
 0x3a3   :  { %3785 = vmatpush3.bf16.msra.mxu0 %v4052_v46 }
 0x3a4   :  { %3786 = vmatprep.subr.bf16.mxu0 %v4114_v39 }
 0x3a7   :  { %3787 = vmatpush3.bf16.msra.mxu0 %v4053_v48 }
 0x3a8   :  { %3788 = vmatprep.subr.bf16.mxu0 %v4114_v39 }
 0x3ab   :  { %3789 = vmatpush3.bf16.msra.mxu0 %v4054_v49 }
 0x3ac   :  { %2704 = vmatprep.subr.bf16.mxu0 %v4060_v11 }
 0x3ae   :  { %3791 = vmatmul.mubr.bf16.vlgmr.msra.gmra.mxu0 %v1625_v41  ;;  %v4100_v41 = vld [vmem:[%s4837_s2 + $0x3c8] ss:$20 sps:$4 sm:$0xff]  }
 0x3af   :  { %2736 = vmatprep.mubr.bf16.mxu0 %v4113_v1  ;;  %2705 = vmatpush1.bf16.msra.mxu0 %v4058_v10 }
 0x3b0   :  { %2706 = vmatprep.subr.bf16.mxu0 %v4066_v14  ;;  %v4105_v14 = vld [vmem:[%s4837_s2 + $0x498] ss:$20 sps:$4 sm:$0xff]  }
 0x3b3   :  { %2707 = vmatpush1.bf16.msra.mxu0 %v4064_v13  ;;  %v4104_v13 = vld [vmem:[%s4837_s2 + $0x4c0] ss:$20 sps:$4 sm:$0xff]  }
 0x3b4   :  { %2708 = vmatprep.subr.bf16.mxu0 %v4072_v18  ;;  %v4110_v18 = vld [vmem:[%s4837_s2 + $0x3d0] ss:$20 sps:$4 sm:$0xff]  }
 0x3b7   :  { %2709 = vmatpush1.bf16.msra.mxu0 %v4070_v17  ;;  %v4109_v17 = vld [vmem:[%s4837_s2 + $0x3f8] ss:$20 sps:$4 sm:$0xff]  }
 0x3b8   :  { %2710 = vmatprep.subr.bf16.mxu0 %v4078_v21 }
 0x3bb   :  { %2711 = vmatpush1.bf16.msra.mxu0 %v4076_v22 }
 0x3bc   :  { %2712 = vmatprep.subr.bf16.mxu0 %v4084_v24 }
 0x3bf   :  { %2713 = vmatpush1.bf16.msra.mxu0 %v4082_v26 }
 0x3c0   :  { %2714 = vmatprep.subr.bf16.mxu0 %v4090_v28 }
 0x3c3   :  { %2715 = vmatpush1.bf16.msra.mxu0 %v4088_v30 }
 0x3c4   :  { %2716 = vmatprep.subr.bf16.mxu0 %v4096_v34 }
 0x3c7   :  { %2717 = vmatpush1.bf16.msra.mxu0 %v4094_v35 }
 0x3c8   :  { %2718 = vmatprep.subr.bf16.mxu0 %v4102_v40 }
 0x3cb   :  { %2719 = vmatpush1.bf16.msra.mxu0 %v4100_v41 }
 0x44e   :  { %v1917_v50 = vpop.f32.mrf.mxu0  ;;  %v1960_v54 = vpop.f32.mrf.mxu1 }
 0x450   :  { %v1919_v51 = vpop.f32.mrf.mxu0  ;;  %v1962_v59 = vpop.f32.mrf.mxu1 }
 0x452   :  { %v1921_v52 = vpop.f32.mrf.mxu0  ;;  %v1964_v0 = vpop.f32.mrf.mxu1 }
 0x454   :  { %v1923_v56 = vpop.f32.mrf.mxu0  ;;  %v1966_v2 = vpop.f32.mrf.mxu1 }
 0x455   :  { %3794 = vmatprep.subr.mxu1 %v1923_v56 }
 0x456   :  { %3795 = vmatpush3.msra.mxu1 %v1923_v56 }
 0x457   :  { %3796 = vmatprep.subr.mxu1 %v1919_v51 }
 0x458   :  { %3797 = vmatpush3.msra.mxu1 %v1919_v51 }
 0x459   :  { %3801 = vmatprep.subr.mxu1 %v1921_v52  ;;  %3799 = vmatmul.mubr.msk.f32.vlgmr.msra.gmra.mxu1 %vm411_vm1, %v4290_v53 }
 0x45a   :  { %3802 = vmatpush3.msra.mxu1 %v1921_v52  ;;  %3805 = vmatprep.mubr.msk.f32.mxu1 %vm411_vm1, %v4295_v55 }
 0x45b   :  { %3803 = vmatprep.subr.mxu1 %v1917_v50 }
 0x45c   :  { %3804 = vmatpush3.msra.mxu1 %v1917_v50 }
 0x45d   :  { %3808 = vmatprep.subr.mxu1 %v1964_v0  ;;  %3806 = vmatmul.mubr.msk.f32.vlgmr.msra.gmra.mxu1 %vm411_vm1, %v4304_v57 }
 0x45e   :  { %3809 = vmatpush3.msra.mxu1 %v1964_v0  ;;  %3812 = vmatprep.mubr.msk.f32.mxu1 %vm411_vm1, %v4309_v58 }
 0x45f   :  { %3810 = vmatprep.subr.mxu1 %v1960_v54 }
 0x460   :  { %3811 = vmatpush3.msra.mxu1 %v1960_v54 }
 0x461   :  { %3815 = vmatprep.subr.mxu1 %v1966_v2  ;;  %3813 = vmatmul.mubr.msk.f32.vlgmr.msra.gmra.mxu1 %vm411_vm1, %v4318_v60 }
 0x462   :  { %3816 = vmatpush3.msra.mxu1 %v1966_v2  ;;  %3819 = vmatprep.mubr.msk.f32.mxu1 %vm411_vm1, %v4323_v61  ;;  %v3447_v2 = vld [vmem:[%s4840_s3 + $0x2] ss:$0 sm:$0xff] }
 0x463   :  { %3817 = vmatprep.subr.mxu1 %v1962_v59 }
 0x464   :  { %3818 = vmatpush3.msra.mxu1 %v1962_v59 }
 0x465   :  { %3820 = vmatmul.mubr.msk.f32.vlgmr.msra.gmra.mxu1 %vm411_vm1, %v4332_v62 }
 0x466   :  { %3826 = vmatprep.mubr.msk.f32.mxu1 %vm411_vm1, %v4337_v63 }
 0x46e   :  { %v2003_v3 = vpop.f32.mrf.mxu0 }
 0x470   :  { %v3792_v4 = vpop.f32.mrf.mxu0 }
 0x472   :  { %v2006_v6 = vpop.f32.mrf.mxu0 }
 0x473   :  { %3822 = vmatprep.subr.mxu1 %v2006_v6 }
 0x474   :  { %v3793_v7 = vpop.f32.mrf.mxu0  ;;  %3823 = vmatpush3.msra.mxu1 %v2006_v6 }
 0x475   :  { %3824 = vmatprep.subr.mxu1 %v2003_v3 }
 0x476   :  { %3825 = vmatpush3.msra.mxu1 %v2003_v3 }
 0x477   :  { %3827 = vmatmul.mubr.msk.f32.vlgmr.msra.gmra.mxu1 %vm411_vm1, %v4346_v5  ;;  %2661 = vmatprep.subr.bf16.mxu1 %v4057_v9 }
 0x478   :  { %2693 = vmatprep.mubr.bf16.mxu1 %v4113_v1  ;;  %2662 = vmatpush1.bf16.msra.mxu1 %v4055_v8  ;;  %v4061_v1 = vld [vmem:[%s4837_s2 + $0x4b0] ss:$20 sps:$4 sm:$0xff]  }
 0x479   :  { %2663 = vmatprep.subr.bf16.mxu1 %v4063_v12 }
 0x47c   :  { %2664 = vmatpush1.bf16.msra.mxu1 %v4061_v1  ;;  %v4103_v1 = vld [vmem:[%s4837_s2 + $0x4e8] ss:$20 sps:$4 sm:$0xff]  }
 0x47d   :  { %2665 = vmatprep.subr.bf16.mxu1 %v4069_v16  ;;  %v4107_v16 = vld [vmem:[%s4837_s2 + $0x448] ss:$20 sps:$4 sm:$0xff]  }
 0x480   :  { %2666 = vmatpush1.bf16.msra.mxu1 %v4067_v15  ;;  %v4106_v15 = vld [vmem:[%s4837_s2 + $0x470] ss:$20 sps:$4 sm:$0xff]  }
 0x481   :  { %2667 = vmatprep.subr.bf16.mxu1 %v4075_v19 }
 0x484   :  { %2668 = vmatpush1.bf16.msra.mxu1 %v4073_v20 }
 0x485   :  { %2669 = vmatprep.subr.bf16.mxu1 %v4081_v23 }
 0x488   :  { %2670 = vmatpush1.bf16.msra.mxu1 %v4079_v25 }
 0x489   :  { %2671 = vmatprep.subr.bf16.mxu1 %v4087_v27 }
 0x48c   :  { %2672 = vmatpush1.bf16.msra.mxu1 %v4085_v29 }
 0x48d   :  { %2673 = vmatprep.subr.bf16.mxu1 %v4093_v31 }
 0x490   :  { %2674 = vmatpush1.bf16.msra.mxu1 %v4091_v32 }
 0x491   :  { %2675 = vmatprep.subr.bf16.mxu1 %v4099_v37 }
 0x494   :  { %2676 = vmatpush1.bf16.msra.mxu1 %v4097_v38  ;;  %v3547_v38 = vld [vmem:[%s4840_s3 + $0x3] ss:$0 sm:$0xff] }
 0x495   :  { %3829 = vmatprep.subr.bf16.mxu1 %v4114_v39 }
 0x519   :  { %v3800_v42 = vpop.f32.mrf.mxu1 }
 0x51b   :  { %v2076_v43 = vpop.f32.mrf.mxu1 }
 0x51d   :  { %v3807_v44 = vpop.f32.mrf.mxu1 }
 0x51e   :  { %v2157_v49 = vadd.f32 %v3807_v44, %v3800_v42 }
 0x51f   :  { %v2151_v45 = vpop.f32.mrf.mxu1 }
 0x520   :  { %v2152_v50 = vadd.f32 %v2151_v45, %v2076_v43 }
 0x521   :  { %v3814_v46 = vpop.f32.mrf.mxu1 }
 0x522   :  { %v2236_v52 = vadd.f32 %v3814_v46, %v2157_v49 }
 0x523   :  { %v2226_v48 = vpop.f32.mrf.mxu1 }
 0x524   :  { %v2235_v54 = vadd.f32 %v2226_v48, %v2152_v50 }
 0x525   :  { %v3821_v51 = vpop.f32.mrf.mxu1 }
 0x526   :  { %v2313_v59 = vadd.f32 %v3821_v51, %v2236_v52 }
 0x527   :  { %v2303_v56 = vpop.f32.mrf.mxu1 }
 0x528   :  { %v2312_v3 = vadd.f32 %v2303_v56, %v2235_v54 }
 0x537   :  { %v3828_v0 = vpop.f32.mrf.mxu1 }
 0x538   :  { %v2390_v4 = vadd.f32 %v3828_v0, %v2313_v59 }
 0x539   :  { %v2380_v6 = vpop.f32.mrf.mxu1 }
 0x53a   :  { %v2400_v7 = vadd.f32 %v3447_v2, %v2390_v4  ;;  %v2389_v8 = vadd.f32 %v2380_v6, %v2312_v3 }
 0x53c   :  { %v2399_v9 = vadd.f32 %v3447_v2, %v2389_v8  ;;  %v2402_v10 = vmax.f32 %v2400_v7, 0.0 }
 0x53e   :  { %v2401_v11 = vmax.f32 %v2399_v9, 0.0 }
 0x540   :  { %v2403_v12 = vpack.c.bf16 %v2402_v10, %v2401_v11 }
 0x542   :  { %2694 = vmatmul.mubr.bf16.vlgmr.msra.gmra.mxu1 %v2403_v12  ;;  %2737 = vmatmul.mubr.bf16.vlgmr.msra.gmra.mxu0 %v2403_v12 }
 0x543   :  { %3830 = vmatpush3.bf16.msra.mxu1 %v4103_v1  ;;  %3845 = vmatprep.mubr.msk.bf16.mxu1 %vm4115_vm0, %v4114_v39 }
 0x544   :  { %3831 = vmatprep.subr.bf16.mxu1 %v4114_v39  ;;  %3853 = vmatprep.mubr.msk.f32.mxu0 %vm411_vm1, %v4283_v47  ;;  %v4108_v47 = vld [vmem:[%s4837_s2 + $0x420] ss:$20 sps:$4 sm:$0xff]  }
 0x547   :  { %3832 = vmatpush3.bf16.msra.mxu1 %v4104_v13 }
 0x548   :  { %3833 = vmatprep.subr.bf16.mxu1 %v4114_v39 }
 0x54b   :  { %3834 = vmatpush3.bf16.msra.mxu1 %v4105_v14 }
 0x54c   :  { %3835 = vmatprep.subr.bf16.mxu1 %v4114_v39 }
 0x54f   :  { %3836 = vmatpush3.bf16.msra.mxu1 %v4106_v15 }
 0x550   :  { %3837 = vmatprep.subr.bf16.mxu1 %v4114_v39 }
 0x553   :  { %3838 = vmatpush3.bf16.msra.mxu1 %v4107_v16 }
 0x554   :  { %3839 = vmatprep.subr.bf16.mxu1 %v4114_v39 }
 0x557   :  { %3840 = vmatpush3.bf16.msra.mxu1 %v4108_v47 }
 0x558   :  { %3841 = vmatprep.subr.bf16.mxu1 %v4114_v39 }
 0x55b   :  { %3842 = vmatpush3.bf16.msra.mxu1 %v4109_v17 }
 0x55c   :  { %3843 = vmatprep.subr.bf16.mxu1 %v4114_v39 }
 0x55f   :  { %3844 = vmatpush3.bf16.msra.mxu1 %v4110_v18 }
 0x562   :  { %3846 = vmatmul.mubr.bf16.vlgmr.msra.gmra.mxu1 %v2403_v12 }
 0x602   :  { %v2695_v19 = vpop.f32.mrf.mxu1  ;;  %v2738_v22 = vpop.f32.mrf.mxu0 }
 0x604   :  { %v2697_v20 = vpop.f32.mrf.mxu1  ;;  %v2740_v24 = vpop.f32.mrf.mxu0 }
 0x606   :  { %v2699_v21 = vpop.f32.mrf.mxu1  ;;  %v2742_v39 = vpop.f32.mrf.mxu0 }
 0x608   :  { %v2701_v23 = vpop.f32.mrf.mxu1  ;;  %v2744_v25 = vpop.f32.mrf.mxu0 }
 0x609   :  { %3849 = vmatprep.subr.mxu0 %v2701_v23 }
 0x60a   :  { %3850 = vmatpush3.msra.mxu0 %v2701_v23 }
 0x60b   :  { %3851 = vmatprep.subr.mxu0 %v2697_v20 }
 0x60c   :  { %3852 = vmatpush3.msra.mxu0 %v2697_v20 }
 0x60d   :  { %3856 = vmatprep.subr.mxu0 %v2699_v21  ;;  %3854 = vmatmul.mubr.msk.f32.vlgmr.msra.gmra.mxu0 %vm411_vm1, %v4290_v53 }
 0x60e   :  { %3857 = vmatpush3.msra.mxu0 %v2699_v21  ;;  %3860 = vmatprep.mubr.msk.f32.mxu0 %vm411_vm1, %v4295_v55 }
 0x60f   :  { %3858 = vmatprep.subr.mxu0 %v2695_v19 }
 0x610   :  { %3859 = vmatpush3.msra.mxu0 %v2695_v19 }
 0x611   :  { %3863 = vmatprep.subr.mxu0 %v2742_v39  ;;  %3861 = vmatmul.mubr.msk.f32.vlgmr.msra.gmra.mxu0 %vm411_vm1, %v4304_v57 }
 0x612   :  { %3864 = vmatpush3.msra.mxu0 %v2742_v39  ;;  %3867 = vmatprep.mubr.msk.f32.mxu0 %vm411_vm1, %v4309_v58 }
 0x613   :  { %3865 = vmatprep.subr.mxu0 %v2738_v22 }
 0x614   :  { %3866 = vmatpush3.msra.mxu0 %v2738_v22 }
 0x615   :  { %3870 = vmatprep.subr.mxu0 %v2744_v25  ;;  %3868 = vmatmul.mubr.msk.f32.vlgmr.msra.gmra.mxu0 %vm411_vm1, %v4318_v60 }
 0x616   :  { %3871 = vmatpush3.msra.mxu0 %v2744_v25  ;;  %3874 = vmatprep.mubr.msk.f32.mxu0 %vm411_vm1, %v4323_v61 }
 0x617   :  { %3872 = vmatprep.subr.mxu0 %v2740_v24 }
 0x618   :  { %3873 = vmatpush3.msra.mxu0 %v2740_v24 }
 0x619   :  { %3875 = vmatmul.mubr.msk.f32.vlgmr.msra.gmra.mxu0 %vm411_vm1, %v4332_v62 }
 0x61a   :  { %3881 = vmatprep.mubr.msk.f32.mxu0 %vm411_vm1, %v4337_v63 }
 0x622   :  { %v2781_v53 = vpop.f32.mrf.mxu1 }
 0x624   :  { %v3847_v55 = vpop.f32.mrf.mxu1 }
 0x626   :  { %v2784_v57 = vpop.f32.mrf.mxu1 }
 0x627   :  { %3877 = vmatprep.subr.mxu0 %v2784_v57 }
 0x628   :  { %v3848_v58 = vpop.f32.mrf.mxu1  ;;  %3878 = vmatpush3.msra.mxu0 %v2784_v57 }
 0x629   :  { %3879 = vmatprep.subr.mxu0 %v2781_v53 }
 0x62a   :  { %3880 = vmatpush3.msra.mxu0 %v2781_v53 }
 0x62b   :  { %3882 = vmatmul.mubr.msk.f32.vlgmr.msra.gmra.mxu0 %vm411_vm1, %v4346_v5 }
 0x6cd   :  { %v3855_v60 = vpop.f32.mrf.mxu0 }
 0x6cf   :  { %v2854_v61 = vpop.f32.mrf.mxu0 }
 0x6d1   :  { %v3862_v26 = vpop.f32.mrf.mxu0 }
 0x6d2   :  { %v2935_v29 = vadd.f32 %v3862_v26, %v3855_v60 }
 0x6d3   :  { %v2929_v27 = vpop.f32.mrf.mxu0 }
 0x6d4   :  { %v2930_v30 = vadd.f32 %v2929_v27, %v2854_v61 }
 0x6d5   :  { %v3869_v28 = vpop.f32.mrf.mxu0 }
 0x6d6   :  { %v3014_v31 = vadd.f32 %v3869_v28, %v2935_v29 }
 0x6d7   :  { %v3004_v62 = vpop.f32.mrf.mxu0 }
 0x6d8   :  { %v3013_v32 = vadd.f32 %v3004_v62, %v2930_v30 }
 0x6d9   :  { %v3876_v63 = vpop.f32.mrf.mxu0 }
 0x6da   :  { %v3091_v35 = vadd.f32 %v3876_v63, %v3014_v31 }
 0x6db   :  { %v3081_v34 = vpop.f32.mrf.mxu0 }
 0x6dc   :  { %v3090_v40 = vadd.f32 %v3081_v34, %v3013_v32 }
 0x6eb   :  { %v3883_v37 = vpop.f32.mrf.mxu0 }
 0x6ec   :  { %v3168_v5 = vadd.f32 %v3883_v37, %v3091_v35 }
 0x6ed   :  { %v3158_v41 = vpop.f32.mrf.mxu0 }
 0x6ee   :  { %v3178_v42 = vadd.f32 %v3547_v38, %v3168_v5  ;;  %v3167_v43 = vadd.f32 %v3158_v41, %v3090_v40 }
 0x6f0   :  { %v3180_v44 = vmul.f32 0.3, %v3178_v42  ;;  %v3177_v45 = vadd.f32 %v3547_v38, %v3167_v43 }
 0x6f2   :  { %v3182_v46 = vadd.f32 %v3180_v44, %v4609_v33  ;;  %v3179_v48 = vmul.f32 0.3, %v3177_v45 }
 0x6f4   :  { %3184 = vst [vmem:[%s4841_s4 + $0x8] sm:$0xff] %v3182_v46  ;;  %v3181_v49 = vadd.f32 %v3179_v48, %v4614_v36 }
 0x6f6   :  { %3183 = vst [vmem:[%s4841_s4] sm:$0xff] %v3181_v49 }

</bundles_post_ra>
